<compile_context>
chip_gen: v7x
topology: tpu7x:2x2x1
jax: 0.10.0
libtpu: 0.0.40
codegen_flags: <defaults>
</compile_context>

<pallas_src>
import jax
import jax.numpy as jnp
from jax.experimental import pallas as pl
from jax.experimental.pallas import tpu as pltpu

NN_LAYER_1 = 400
NN_LAYER_2 = 300

L1P = 512   # NN_LAYER_1 zero-padded to a lane multiple (exact: zero weights AND zero biases)
L2P = 384   # NN_LAYER_2 zero-padded to a lane multiple

TB_CAP = 2048   # batch (lane) tile cap


def _round_up(x, m):
    return ((x + m - 1) // m) * m


def _cdiv(a, b):
    return -(-a // b)


def double_q_kernel(x_ref, w1_ref, b1_ref, w2_ref, b2_ref, w3_ref, b3_ref, q_ref):
    """Transposed fused MLP block (batch on lanes):

       h1T = relu(W1^T @ x^T + b1)        (L1P, tb)   bf16 MXU, f32 accumulation
       h2T = relu(W2^T @ h1T + b2)        (L2P, tb)   bf16 MXU, f32 accumulation
       qT  = sum_j w3[j]*h2T[j,:] + b3    (1,  tb)    VPU/XLU sublane reduction (off MXU)
    """
    h1 = jnp.dot(w1_ref[...], x_ref[...],
                 preferred_element_type=jnp.float32) + b1_ref[...]
    h1 = jnp.maximum(h1, 0.0)                                    # f32 epilogue

    h2 = jnp.dot(w2_ref[...], h1.astype(jnp.bfloat16),
                 preferred_element_type=jnp.float32) + b2_ref[...]
    h2 = jnp.maximum(h2, 0.0)

    # Final [L2P,1] head as a sublane reduction -> lane-dense (1, tb) row.
    q = jnp.sum(h2 * w3_ref[...], axis=0, keepdims=True) + b3_ref[0, 0]
    q_ref[...] = q.astype(q_ref.dtype)


def double_q_forward(state, action, params):
    """Single pallas_call over a 1-D batch grid; weights stay resident in VMEM."""
    w1t, b1c, w2t, b2c, w3c, b3 = params
    B = state.shape[0]
    K = state.shape[1] + action.shape[1]                   # S + A

    # Batch tiling: minimize padding (128-lane granularity); keep >=2 grid steps for large
    # batches so v7x's two TensorCores both get work through the "parallel" axis.
    num_blocks = _cdiv(B, TB_CAP)
    if num_blocks == 1 and B > 256:
        num_blocks = 2
    tb = _round_up(_cdiv(B, num_blocks), 128)
    b_pad = num_blocks * tb

    # Concat fused into layer 1 by pre-concatenating (layout plumbing, not compute);
    # transpose so batch sits on the lane axis; bf16 input halves the activation DMA.
    x = jnp.concatenate([state, action], axis=1)           # (B, S+A) f32
    if b_pad != B:
        x = jnp.pad(x, ((0, b_pad - B), (0, 0)))
    xt = x.T.astype(jnp.bfloat16)                          # (S+A, b_pad) bf16

    resident = lambda i: (0, 0)                            # weights loaded once across grid steps

    flops = 2 * b_pad * (K * L1P + L1P * L2P + L2P)
    bytes_accessed = (K * L1P * 2 + L1P * L2P * 2          # W1^T, W2^T (bf16)
                      + (L1P + 2 * L2P + 1) * 4            # biases + w3 column + b3 (f32)
                      + b_pad * K * 2 + b_pad * 4)         # input (bf16) + output (f32)

    qt = pl.pallas_call(
        double_q_kernel,
        out_shape=jax.ShapeDtypeStruct((1, b_pad), jnp.float32),
        grid=(num_blocks,),
        in_specs=[
            pl.BlockSpec((K, tb), lambda i: (0, i)),       # x^T tile (batch on lanes), bf16
            pl.BlockSpec((L1P, K), resident),              # W1^T (bf16, tiny)
            pl.BlockSpec((L1P, 1), resident),              # b1 column (f32)
            pl.BlockSpec((L2P, L1P), resident),            # W2^T (bf16, dominant)
            pl.BlockSpec((L2P, 1), resident),              # b2 column (f32)
            pl.BlockSpec((L2P, 1), resident),              # w3 column (f32)
            pl.BlockSpec(memory_space=pltpu.MemorySpace.SMEM),   # b3 scalar
        ],
        out_specs=pl.BlockSpec((1, tb), lambda i: (0, i)),  # lane-dense q row
        compiler_params=pltpu.CompilerParams(
            dimension_semantics=("parallel",),
            vmem_limit_bytes=32 * 1024 * 1024),
        cost_estimate=pl.CostEstimate(
            flops=flops, transcendentals=0, bytes_accessed=bytes_accessed),
    )(xt, w1t, b1c, w2t, b2c, w3c, b3)
    return qt[0, :B].reshape(B, 1)


def init_params(key, state_dim, act_dim):
    """PyTorch-Linear-like uniform fan-in init; returns (kernel_params, raw_params)."""
    in_dim = state_dim + act_dim
    dims = [(in_dim, NN_LAYER_1), (NN_LAYER_1, NN_LAYER_2), (NN_LAYER_2, 1)]
    raw = []
    for fan_in, fan_out in dims:
        key, kw, kb = jax.random.split(key, 3)
        bound = 1.0 / jnp.sqrt(jnp.float32(fan_in))
        w = jax.random.uniform(kw, (fan_in, fan_out), jnp.float32, -bound, bound)
        b = jax.random.uniform(kb, (1, fan_out), jnp.float32, -bound, bound)
        raw += [w, b]
    w1, b1, w2, b2, w3, b3 = raw

    # Kernel layout (transposed, lane = batch): zero-pad hidden widths to lane multiples
    # (exact — zero weights AND zero biases), store both weight matrices transposed in bf16
    # (f32 accumulation in-kernel), biases / final-layer weights as f32 columns, b3 as a
    # (1,1) SMEM scalar.
    w1t = jnp.pad(w1, ((0, 0), (0, L1P - NN_LAYER_1))).T.astype(jnp.bfloat16)            # (L1P, S+A)
    b1c = jnp.pad(b1, ((0, 0), (0, L1P - NN_LAYER_1))).T                                  # (L1P, 1)
    w2t = jnp.pad(w2, ((0, L1P - NN_LAYER_1), (0, L2P - NN_LAYER_2))).T.astype(jnp.bfloat16)  # (L2P, L1P)
    b2c = jnp.pad(b2, ((0, 0), (0, L2P - NN_LAYER_2))).T                                  # (L2P, 1)
    w3c = jnp.pad(w3, ((0, L2P - NN_LAYER_2), (0, 0)))                                    # (L2P, 1)
    kernel_params = (w1t, b1c, w2t, b2c, w3c, b3)
    return kernel_params, tuple(raw)


def reference_forward(state, action, raw_params):
    """Pure-JAX reference mirroring the kernel's bf16 quantization of x/W1 and h1/W2."""
    w1, b1, w2, b2, w3, b3 = raw_params
    hp = jax.lax.Precision.HIGHEST
    f32 = jnp.float32
    x = jnp.concatenate([state, action], axis=1)
    xq = x.astype(jnp.bfloat16).astype(f32)
    w1q = w1.astype(jnp.bfloat16).astype(f32)
    h1 = jnp.maximum(jnp.dot(xq, w1q, precision=hp) + b1, 0.0)
    h1q = h1.astype(jnp.bfloat16).astype(f32)
    w2q = w2.astype(jnp.bfloat16).astype(f32)
    h2 = jnp.maximum(jnp.dot(h1q, w2q, precision=hp) + b2, 0.0)
    return jnp.dot(h2, w3, precision=hp) + b3


if __name__ == "__main__":
    key = jax.random.PRNGKey(0)
    batch, state_dim, act_dim = 2, 8, 4

    k_params, k_state, k_act = jax.random.split(key, 3)
    kernel_params, raw_params = init_params(k_params, state_dim, act_dim)
    state = jax.random.normal(k_state, (batch, state_dim), jnp.float32)
    action = jax.random.normal(k_act, (batch, act_dim), jnp.float32)

    q = double_q_forward(state, action, kernel_params)
    jax.block_until_ready(q)

    q_ref = reference_forward(state, action, raw_params)
    assert q.shape == (batch, 1)
    assert jnp.allclose(q, q_ref, atol=1e-2, rtol=1e-2), (q, q_ref)

    print("KERNEL_OK")
</pallas_src>

<mosaic_0001>
module attributes {stable_mosaic.version = 11 : i64} {
  func.func @double_q_kernel(%arg0: i32, %arg1: memref<12x128xbf16, #tpu.memory_space<vmem>>, %arg2: memref<512x12xbf16, #tpu.memory_space<vmem>>, %arg3: memref<512x1xf32, #tpu.memory_space<vmem>>, %arg4: memref<384x512xbf16, #tpu.memory_space<vmem>>, %arg5: memref<384x1xf32, #tpu.memory_space<vmem>>, %arg6: memref<384x1xf32, #tpu.memory_space<vmem>>, %arg7: memref<1x1xf32, #tpu.memory_space<smem>>, %arg8: memref<1x128xf32, #tpu.memory_space<vmem>>) attributes {dimension_semantics = [#tpu.dimension_semantics<parallel>], iteration_bounds = array<i64: 1>, scalar_prefetch = 0 : i64, scratch_operands = 0 : i64, tpu.core_type = #tpu.core_type<tc>, window_params = [{transform_indices = @transform_0, window_bounds = array<i64: 12, 128>}, {pipeline_mode = #tpu.pipeline_mode<synchronous>, transform_indices = @transform_1, window_bounds = array<i64: 512, 12>}, {pipeline_mode = #tpu.pipeline_mode<synchronous>, transform_indices = @transform_2, window_bounds = array<i64: 512, 1>}, {pipeline_mode = #tpu.pipeline_mode<synchronous>, transform_indices = @transform_3, window_bounds = array<i64: 384, 512>}, {pipeline_mode = #tpu.pipeline_mode<synchronous>, transform_indices = @transform_4, window_bounds = array<i64: 384, 1>}, {pipeline_mode = #tpu.pipeline_mode<synchronous>, transform_indices = @transform_5, window_bounds = array<i64: 384, 1>}, {transform_indices = @transform_6, window_bounds = array<i64: 1, 1>}, {transform_indices = @transform_7, window_bounds = array<i64: 1, 128>}]} {
    %c0 = arith.constant 0 : index
    %c0_0 = arith.constant 0 : index
    %0 = vector.load %arg2[%c0, %c0_0] : memref<512x12xbf16, #tpu.memory_space<vmem>>, vector<512x12xbf16>
    %c0_1 = arith.constant 0 : index
    %c0_2 = arith.constant 0 : index
    %1 = vector.load %arg1[%c0_1, %c0_2] : memref<12x128xbf16, #tpu.memory_space<vmem>>, vector<12x128xbf16>
    %cst = arith.constant dense<0.000000e+00> : vector<512x128xf32>
    %2 = tpu.matmul %0, %1, %cst {dimension_numbers = #tpu.dot_dimension_numbers<[1], [0], [0], [1], [0, 0, 1, 1], [], []>} : vector<512x12xbf16>, vector<12x128xbf16>, vector<512x128xf32> -> vector<512x128xf32>
    %c0_3 = arith.constant 0 : index
    %c0_4 = arith.constant 0 : index
    %3 = vector.load %arg3[%c0_3, %c0_4] : memref<512x1xf32, #tpu.memory_space<vmem>>, vector<512x1xf32>
    %4 = vector.broadcast %3 : vector<512x1xf32> to vector<512x128xf32>
    %5 = arith.addf %2, %4 : vector<512x128xf32>
    %cst_5 = arith.constant 0.000000e+00 : f32
    %6 = vector.broadcast %cst_5 : f32 to vector<512x128xf32>
    %7 = arith.maximumf %5, %6 : vector<512x128xf32>
    %c0_6 = arith.constant 0 : index
    %c0_7 = arith.constant 0 : index
    %8 = vector.load %arg4[%c0_6, %c0_7] : memref<384x512xbf16, #tpu.memory_space<vmem>>, vector<384x512xbf16>
    %9 = arith.truncf %7 : vector<512x128xf32> to vector<512x128xbf16>
    %cst_8 = arith.constant dense<0.000000e+00> : vector<384x128xf32>
    %10 = tpu.matmul %8, %9, %cst_8 {dimension_numbers = #tpu.dot_dimension_numbers<[1], [0], [0], [1], [0, 0, 1, 1], [], []>} : vector<384x512xbf16>, vector<512x128xbf16>, vector<384x128xf32> -> vector<384x128xf32>
    %c0_9 = arith.constant 0 : index
    %c0_10 = arith.constant 0 : index
    %11 = vector.load %arg5[%c0_9, %c0_10] : memref<384x1xf32, #tpu.memory_space<vmem>>, vector<384x1xf32>
    %12 = vector.broadcast %11 : vector<384x1xf32> to vector<384x128xf32>
    %13 = arith.addf %10, %12 : vector<384x128xf32>
    %cst_11 = arith.constant 0.000000e+00 : f32
    %14 = vector.broadcast %cst_11 : f32 to vector<384x128xf32>
    %15 = arith.maximumf %13, %14 : vector<384x128xf32>
    %c0_12 = arith.constant 0 : index
    %c0_13 = arith.constant 0 : index
    %16 = vector.load %arg6[%c0_12, %c0_13] : memref<384x1xf32, #tpu.memory_space<vmem>>, vector<384x1xf32>
    %17 = vector.broadcast %16 : vector<384x1xf32> to vector<384x128xf32>
    %18 = arith.mulf %15, %17 : vector<384x128xf32>
    %cst_14 = arith.constant dense<0.000000e+00> : vector<128xf32>
    %19 = vector.multi_reduction <add>, %18, %cst_14 [0] : vector<384x128xf32> to vector<128xf32>
    %20 = vector.shape_cast %19 : vector<128xf32> to vector<1x128xf32>
    %c0_15 = arith.constant 0 : index
    %c0_16 = arith.constant 0 : index
    %21 = memref.load %arg7[%c0_15, %c0_16] : memref<1x1xf32, #tpu.memory_space<smem>>
    %22 = vector.broadcast %21 : f32 to vector<1x128xf32>
    %23 = arith.addf %20, %22 : vector<1x128xf32>
    %c0_17 = arith.constant 0 : index
    %c0_18 = arith.constant 0 : index
    %24 = vector.load %arg8[%c0_17, %c0_18] : memref<1x128xf32, #tpu.memory_space<vmem>>, vector<1x128xf32>
    tpu.vector_store %arg8[%c0_17, %c0_18], %23 {strides = array<i32>} : memref<1x128xf32, #tpu.memory_space<vmem>>, vector<1x128xf32>,
    return
  }
  func.func @transform_0(%arg0: i32) -> (i32, i32) {
    %c0_i32 = arith.constant 0 : i32
    %c0_i32_0 = arith.constant 0 : i32
    return %c0_i32, %arg0 : i32, i32
  }
  func.func @transform_1(%arg0: i32) -> (i32, i32) {
    %c0_i32 = arith.constant 0 : i32
    %c0_i32_0 = arith.constant 0 : i32
    %c0_i32_1 = arith.constant 0 : i32
    return %c0_i32, %c0_i32_0 : i32, i32
  }
  func.func @transform_2(%arg0: i32) -> (i32, i32) {
    %c0_i32 = arith.constant 0 : i32
    %c0_i32_0 = arith.constant 0 : i32
    %c0_i32_1 = arith.constant 0 : i32
    return %c0_i32, %c0_i32_0 : i32, i32
  }
  func.func @transform_3(%arg0: i32) -> (i32, i32) {
    %c0_i32 = arith.constant 0 : i32
    %c0_i32_0 = arith.constant 0 : i32
    %c0_i32_1 = arith.constant 0 : i32
    return %c0_i32, %c0_i32_0 : i32, i32
  }
  func.func @transform_4(%arg0: i32) -> (i32, i32) {
    %c0_i32 = arith.constant 0 : i32
    %c0_i32_0 = arith.constant 0 : i32
    %c0_i32_1 = arith.constant 0 : i32
    return %c0_i32, %c0_i32_0 : i32, i32
  }
  func.func @transform_5(%arg0: i32) -> (i32, i32) {
    %c0_i32 = arith.constant 0 : i32
    %c0_i32_0 = arith.constant 0 : i32
    %c0_i32_1 = arith.constant 0 : i32
    return %c0_i32, %c0_i32_0 : i32, i32
  }
  func.func @transform_6(%arg0: i32) -> (i32, i32) {
    %c0_i32 = arith.constant 0 : i32
    %c0_i32_0 = arith.constant 0 : i32
    %c0_i32_1 = arith.constant 0 : i32
    return %c0_i32, %c0_i32_0 : i32, i32
  }
  func.func @transform_7(%arg0: i32) -> (i32, i32) {
    %c0_i32 = arith.constant 0 : i32
    %c0_i32_0 = arith.constant 0 : i32
    return %c0_i32, %arg0 : i32, i32
  }
}

</mosaic_0001>

<bundles_post_ra>
// kernel: tpu_custom_call.1
= control target key start
LH: loop header
LB: loop body
LE: loop exit
PB: predicated region body
PF: predicated region fallthrough
CT: control target
= control target key end

     0   :  { %vm741_vm0 = vcmask 1045504   ;;  %v3503_v2 = vmov 0   ;;  %vm644_vm1 = vcmask 97280   ;;  %s4947_s0 = inlined_call_operand.vmem [shape: bf16[12,128], index: 0, kind: input, shape index: {}]   ;;  %s4948_s1 = inlined_call_operand.vmem [shape: bf16[512,12], index: 1, kind: input, shape index: {}]   ;;  %s4949_s2 = inlined_call_operand.vmem [shape: f32[512,1], index: 2, kind: input, shape index: {}]   ;;  %s4950_s3 = inlined_call_operand.vmem [shape: bf16[384,512], index: 3, kind: input, shape index: {}]   ;;  %s4951_s4 = inlined_call_operand.vmem [shape: f32[384,1], index: 4, kind: input, shape index: {}]   ;;  %s4952_s5 = inlined_call_operand.vmem [shape: f32[384,1], index: 5, kind: input, shape index: {}]   ;;  %s4953_s6 = inlined_call_operand.<no memory space> [shape: f32[1,1], index: 6, kind: input, shape index: {}]   ;;  %s4954_s7 = inlined_call_operand.hbm [shape: f32[1,128], index: 7, kind: output, shape index: {}]  }
   0x1   :  { %v97_v0 = vld [vmem:[%s4949_s2 + $0x10] sm:$0xff]  ;;  %v95_v1 = vld [vmem:[%s4949_s2] sm:$0xff]  ;;  %3301 = vset.pattern.permute.xlu1 %v3503_v2  ;;  %3300 = vset.pattern.permute.xlu0 %v3503_v2  ;;  %v98_v4 = vld [vmem:[%s4949_s2 + $0x18] sm:$0xff] }
   0x2   :  { %v3302_v3 = vld [vmem:[%s4947_s0] sm:$0x3f]   ;;  %171 = vperm.xlu1 %3301, %v97_v0   ;;  %161 = vperm.xlu0 %3300, %v95_v1   ;;  %v96_v5 = vld [vmem:[%s4949_s2 + $0x8] sm:$0xff]  ;;  %v3305_v9 = vld [vmem:[%s4948_s1 + $0x10] sm:$0xff]  }
   0x3   :  { %3297 = vmatprep.subr.msk.bf16.mxu0 %vm741_vm0, %v3302_v3  ;;  %v743_v6 = vsel %vm741_vm0, %v3302_v3, 0  ;;  %v3303_v7 = vld [vmem:[%s4948_s1] sm:$0xff]   ;;  %1994 = vmatprep.subr.bf16.mxu1 %v3503_v2  ;;  %v3304_v8 = vld [vmem:[%s4948_s1 + $0x8] sm:$0xff]   ;;  %v102_v12 = vld [vmem:[%s4949_s2 + $0x38] sm:$0xff] }
   0x4   :  { %3094 = vmatpush3.bf16.msra.mxu0 %v743_v6  ;;  %3095 = vmatprep.mubr.msk.bf16.mxu0 %vm644_vm1, %v3303_v7  ;;  %v100_v10 = vld [vmem:[%s4949_s2 + $0x28] sm:$0xff]  ;;  %v99_v11 = vld [vmem:[%s4949_s2 + $0x20] sm:$0xff]  ;;  %v101_v13 = vld [vmem:[%s4949_s2 + $0x30] sm:$0xff] }
   0x5   :  { %2219 = vmatprep.subr.bf16.mxu0 %v3503_v2  ;;  %v3306_v14 = vld [vmem:[%s4948_s1 + $0x18] sm:$0xff]   ;;  %v3307_v15 = vld [vmem:[%s4948_s1 + $0x20] sm:$0xff]   ;;  %v104_v16 = vld [vmem:[%s4949_s2 + $0x48] sm:$0xff] }
   0x6   :  { %176 = vperm.xlu1 %3301, %v98_v4   ;;  %166 = vperm.xlu0 %3300, %v96_v5   ;;  %v103_v17 = vld [vmem:[%s4949_s2 + $0x40] sm:$0xff]  ;;  %v106_v18 = vld [vmem:[%s4949_s2 + $0x58] sm:$0xff]  ;;  %v105_v19 = vld [vmem:[%s4949_s2 + $0x50] sm:$0xff] }
   0x7   :  { %3096 = vmatmul.mubr.msk.bf16.vlgmr.msra.gmra.mrb[0].mxu0 %vm644_vm1, %v3304_v8  ;;  %v3308_v20 = vld [vmem:[%s4948_s1 + $0x28] sm:$0xff]   ;;  %v3309_v21 = vld [vmem:[%s4948_s1 + $0x30] sm:$0xff]   ;;  %v107_v23 = vld [vmem:[%s4949_s2 + $0x60] sm:$0xff] }
   0x8   :  { %3099 = vmatprep.mubr.msk.bf16.mxu0 %vm644_vm1, %v3305_v9  ;;  %v108_v22 = vld [vmem:[%s4949_s2 + $0x68] sm:$0xff]  ;;  %v110_v24 = vld [vmem:[%s4949_s2 + $0x78] sm:$0xff]  ;;  %v109_v25 = vld [vmem:[%s4949_s2 + $0x70] sm:$0xff] }
   0x9   :  { %v3310_v26 = vld [vmem:[%s4948_s1 + $0x38] sm:$0xff]   ;;  %v3311_v27 = vld [vmem:[%s4948_s1 + $0x40] sm:$0xff]   ;;  %v112_v28 = vld [vmem:[%s4949_s2 + $0x88] sm:$0xff] }
   0xa   :  { %186 = vperm.xlu1 %3301, %v100_v10   ;;  %181 = vperm.xlu0 %3300, %v99_v11   ;;  %v111_v29 = vld [vmem:[%s4949_s2 + $0x80] sm:$0xff]  ;;  %v114_v30 = vld [vmem:[%s4949_s2 + $0x98] sm:$0xff]  ;;  %v113_v31 = vld [vmem:[%s4949_s2 + $0x90] sm:$0xff] }
   0xb   :  { %v3312_v32 = vld [vmem:[%s4948_s1 + $0x48] sm:$0xff]   ;;  %v3313_v33 = vld [vmem:[%s4948_s1 + $0x50] sm:$0xff]   ;;  %v115_v35 = vld [vmem:[%s4949_s2 + $0xa0] sm:$0xff] }
   0xc   :  { %v116_v34 = vld [vmem:[%s4949_s2 + $0xa8] sm:$0xff]  ;;  %v118_v36 = vld [vmem:[%s4949_s2 + $0xb8] sm:$0xff]  ;;  %v117_v37 = vld [vmem:[%s4949_s2 + $0xb0] sm:$0xff] }
   0xd   :  { %v3314_v38 = vld [vmem:[%s4948_s1 + $0x58] sm:$0xff]   ;;  %v3315_v39 = vld [vmem:[%s4948_s1 + $0x60] sm:$0xff]   ;;  %v120_v40 = vld [vmem:[%s4949_s2 + $0xc8] sm:$0xff] }
   0xe   :  { %196 = vperm.xlu1 %3301, %v102_v12   ;;  %191 = vperm.xlu0 %3300, %v101_v13   ;;  %v119_v41 = vld [vmem:[%s4949_s2 + $0xc0] sm:$0xff]  ;;  %v122_v42 = vld [vmem:[%s4949_s2 + $0xd8] sm:$0xff]  ;;  %v121_v43 = vld [vmem:[%s4949_s2 + $0xd0] sm:$0xff] }
   0xf   :  { %3100 = vmatmul.mubr.msk.bf16.gmra.mrb[4].mxu0 %vm644_vm1, %v3306_v14  ;;  %v3316_v44 = vld [vmem:[%s4948_s1 + $0x68] sm:$0xff]   ;;  %v3317_v45 = vld [vmem:[%s4948_s1 + $0x70] sm:$0xff]   ;;  %v123_v47 = vld [vmem:[%s4949_s2 + $0xe0] sm:$0xff] }
  0x10   :  { %3103 = vmatprep.mubr.msk.bf16.mxu0 %vm644_vm1, %v3307_v15  ;;  %v124_v46 = vld [vmem:[%s4949_s2 + $0xe8] sm:$0xff]  ;;  %v126_v48 = vld [vmem:[%s4949_s2 + $0xf8] sm:$0xff]  ;;  %v125_v49 = vld [vmem:[%s4949_s2 + $0xf0] sm:$0xff] }
  0x11   :  { %v3318_v50 = vld [vmem:[%s4948_s1 + $0x78] sm:$0xff]   ;;  %v3319_v51 = vld [vmem:[%s4948_s1 + $0x80] sm:$0xff]   ;;  %v128_v52 = vld [vmem:[%s4949_s2 + $0x108] sm:$0xff] }
  0x12   :  { %206 = vperm.xlu1 %3301, %v104_v16   ;;  %201 = vperm.xlu0 %3300, %v103_v17   ;;  %v127_v53 = vld [vmem:[%s4949_s2 + $0x100] sm:$0xff]  ;;  %v130_v54 = vld [vmem:[%s4949_s2 + $0x118] sm:$0xff]  ;;  %v129_v55 = vld [vmem:[%s4949_s2 + $0x110] sm:$0xff] }
  0x13   :  { %v3320_v56 = vld [vmem:[%s4948_s1 + $0x88] sm:$0xff]   ;;  %v3321_v57 = vld [vmem:[%s4948_s1 + $0x90] sm:$0xff]   ;;  %v131_v59 = vld [vmem:[%s4949_s2 + $0x120] sm:$0xff] }
  0x14   :  { %v132_v58 = vld [vmem:[%s4949_s2 + $0x128] sm:$0xff]  ;;  %v134_v60 = vld [vmem:[%s4949_s2 + $0x138] sm:$0xff]  ;;  %v133_v61 = vld [vmem:[%s4949_s2 + $0x130] sm:$0xff] }
  0x15   :  { %v3322_v62 = vld [vmem:[%s4948_s1 + $0x98] sm:$0xff]   ;;  %v3323_v63 = vld [vmem:[%s4948_s1 + $0xa0] sm:$0xff]   ;;  %v136_v0 = vld [vmem:[%s4949_s2 + $0x148] sm:$0xff] }
  0x16   :  { %216 = vperm.xlu1 %3301, %v106_v18   ;;  %211 = vperm.xlu0 %3300, %v105_v19   ;;  %v135_v1 = vld [vmem:[%s4949_s2 + $0x140] sm:$0xff]  ;;  %v138_v3 = vld [vmem:[%s4949_s2 + $0x158] sm:$0xff]  ;;  %v137_v4 = vld [vmem:[%s4949_s2 + $0x150] sm:$0xff] }
  0x17   :  { %3104 = vmatmul.mubr.msk.bf16.gmra.mrb[8].mxu0 %vm644_vm1, %v3308_v20  ;;  %v3324_v5 = vld [vmem:[%s4948_s1 + $0xa8] sm:$0xff]   ;;  %v3325_v6 = vld [vmem:[%s4948_s1 + $0xb0] sm:$0xff]   ;;  %v139_v8 = vld [vmem:[%s4949_s2 + $0x160] sm:$0xff] }
  0x18   :  { %3107 = vmatprep.mubr.msk.bf16.mxu0 %vm644_vm1, %v3309_v21  ;;  %v140_v7 = vld [vmem:[%s4949_s2 + $0x168] sm:$0xff]  ;;  %v142_v9 = vld [vmem:[%s4949_s2 + $0x178] sm:$0xff]  ;;  %v141_v10 = vld [vmem:[%s4949_s2 + $0x170] sm:$0xff] }
  0x19   :  { %v3326_v11 = vld [vmem:[%s4948_s1 + $0xb8] sm:$0xff]   ;;  %v3327_v12 = vld [vmem:[%s4948_s1 + $0xc0] sm:$0xff]   ;;  %v144_v13 = vld [vmem:[%s4949_s2 + $0x188] sm:$0xff] }
  0x1a   :  { %226 = vperm.xlu1 %3301, %v108_v22   ;;  %221 = vperm.xlu0 %3300, %v107_v23   ;;  %v143_v14 = vld [vmem:[%s4949_s2 + $0x180] sm:$0xff]  ;;  %v146_v15 = vld [vmem:[%s4949_s2 + $0x198] sm:$0xff]  ;;  %v145_v16 = vld [vmem:[%s4949_s2 + $0x190] sm:$0xff] }
  0x1b   :  { %v3328_v17 = vld [vmem:[%s4948_s1 + $0xc8] sm:$0xff]   ;;  %v3329_v18 = vld [vmem:[%s4948_s1 + $0xd0] sm:$0xff]   ;;  %v147_v20 = vld [vmem:[%s4949_s2 + $0x1a0] sm:$0xff] }
  0x1c   :  { %v148_v19 = vld [vmem:[%s4949_s2 + $0x1a8] sm:$0xff] }
  0x1e   :  { %236 = vperm.xlu1 %3301, %v110_v24   ;;  %231 = vperm.xlu0 %3300, %v109_v25  }
  0x1f   :  { %3108 = vmatmul.mubr.msk.bf16.gmra.mrb[12].mxu0 %vm644_vm1, %v3310_v26 }
  0x20   :  { %3111 = vmatprep.mubr.msk.bf16.mxu0 %vm644_vm1, %v3311_v27 }
  0x22   :  { %246 = vperm.xlu1 %3301, %v112_v28   ;;  %241 = vperm.xlu0 %3300, %v111_v29  }
  0x26   :  { %256 = vperm.xlu1 %3301, %v114_v30   ;;  %251 = vperm.xlu0 %3300, %v113_v31  }
  0x27   :  { %3112 = vmatmul.mubr.msk.bf16.gmra.mrb[16].mxu0 %vm644_vm1, %v3312_v32 }
  0x28   :  { %3115 = vmatprep.mubr.msk.bf16.mxu0 %vm644_vm1, %v3313_v33 }
  0x2a   :  { %266 = vperm.xlu1 %3301, %v116_v34   ;;  %261 = vperm.xlu0 %3300, %v115_v35  }
  0x2e   :  { %276 = vperm.xlu1 %3301, %v118_v36   ;;  %271 = vperm.xlu0 %3300, %v117_v37  }
  0x2f   :  { %3116 = vmatmul.mubr.msk.bf16.gmra.mrb[20].mxu0 %vm644_vm1, %v3314_v38 }
  0x30   :  { %3119 = vmatprep.mubr.msk.bf16.mxu0 %vm644_vm1, %v3315_v39 }
  0x32   :  { %286 = vperm.xlu1 %3301, %v120_v40   ;;  %281 = vperm.xlu0 %3300, %v119_v41  }
  0x36   :  { %296 = vperm.xlu1 %3301, %v122_v42   ;;  %291 = vperm.xlu0 %3300, %v121_v43  }
  0x37   :  { %3120 = vmatmul.mubr.msk.bf16.gmra.mrb[24].mxu0 %vm644_vm1, %v3316_v44 }
  0x38   :  { %3123 = vmatprep.mubr.msk.bf16.mxu0 %vm644_vm1, %v3317_v45 }
  0x3a   :  { %306 = vperm.xlu1 %3301, %v124_v46   ;;  %301 = vperm.xlu0 %3300, %v123_v47  }
  0x3e   :  { %316 = vperm.xlu1 %3301, %v126_v48   ;;  %311 = vperm.xlu0 %3300, %v125_v49  }
  0x3f   :  { %3124 = vmatmul.mubr.msk.bf16.gmra.mrb[28].mxu0 %vm644_vm1, %v3318_v50 }
  0x40   :  { %3127 = vmatprep.mubr.msk.bf16.mxu0 %vm644_vm1, %v3319_v51 }
  0x42   :  { %326 = vperm.xlu1 %3301, %v128_v52   ;;  %321 = vperm.xlu0 %3300, %v127_v53  }
  0x46   :  { %336 = vperm.xlu1 %3301, %v130_v54   ;;  %331 = vperm.xlu0 %3300, %v129_v55  }
  0x47   :  { %3128 = vmatmul.mubr.msk.bf16.gmra.mrb[32].mxu0 %vm644_vm1, %v3320_v56 }
  0x48   :  { %3131 = vmatprep.mubr.msk.bf16.mxu0 %vm644_vm1, %v3321_v57 }
  0x4a   :  { %346 = vperm.xlu1 %3301, %v132_v58   ;;  %341 = vperm.xlu0 %3300, %v131_v59  }
  0x4e   :  { %356 = vperm.xlu1 %3301, %v134_v60   ;;  %351 = vperm.xlu0 %3300, %v133_v61  }
  0x4f   :  { %3132 = vmatmul.mubr.msk.bf16.gmra.mrb[36].mxu0 %vm644_vm1, %v3322_v62 }
  0x50   :  { %3135 = vmatprep.mubr.msk.bf16.mxu0 %vm644_vm1, %v3323_v63 }
  0x52   :  { %366 = vperm.xlu1 %3301, %v136_v0   ;;  %361 = vperm.xlu0 %3300, %v135_v1  }
  0x56   :  { %376 = vperm.xlu1 %3301, %v138_v3   ;;  %371 = vperm.xlu0 %3300, %v137_v4  }
  0x57   :  { %3136 = vmatmul.mubr.msk.bf16.gmra.mrb[40].mxu0 %vm644_vm1, %v3324_v5 }
  0x58   :  { %3139 = vmatprep.mubr.msk.bf16.mxu0 %vm644_vm1, %v3325_v6 }
  0x5a   :  { %386 = vperm.xlu1 %3301, %v140_v7   ;;  %381 = vperm.xlu0 %3300, %v139_v8  }
  0x5e   :  { %396 = vperm.xlu1 %3301, %v142_v9   ;;  %391 = vperm.xlu0 %3300, %v141_v10  }
  0x5f   :  { %3140 = vmatmul.mubr.msk.bf16.gmra.mrb[44].mxu0 %vm644_vm1, %v3326_v11 }
  0x60   :  { %3143 = vmatprep.mubr.msk.bf16.mxu0 %vm644_vm1, %v3327_v12 }
  0x62   :  { %406 = vperm.xlu1 %3301, %v144_v13   ;;  %401 = vperm.xlu0 %3300, %v143_v14  }
  0x66   :  { %416 = vperm.xlu1 %3301, %v146_v15   ;;  %411 = vperm.xlu0 %3300, %v145_v16  }
  0x67   :  { %3144 = vmatmul.mubr.msk.bf16.gmra.mrb[48].mxu0 %vm644_vm1, %v3328_v17 }
  0x68   :  { %13 = vsyncpa [#allocation4], 0  ;;  %3147 = vmatprep.mubr.msk.bf16.mxu0 %vm644_vm1, %v3329_v18  ;;  %v150_v21 = vld [vmem:[%s4949_s2 + $0x1b8] sm:$0xff]  ;;  %v149_v22 = vld [vmem:[%s4949_s2 + $0x1b0] sm:$0xff]  ;;  %s3504_s29 = smov [#allocation3]  }
  0x69   :  { %v3330_v23 = vld [vmem:[%s4948_s1 + $0xd8] sm:$0xff]   ;;  %v3331_v24 = vld [vmem:[%s4948_s1 + $0xe0] sm:$0xff]   ;;  %v152_v25 = vld [vmem:[%s4949_s2 + $0x1c8] sm:$0xff]  ;;  %s2891_s30 = sshll.u32 %s3504_s29, 4  ;;  %s2892_s30 = int_to_ptr.vmem [resolvable:$true] %s2891_s30 }
  0x6a   :  { %426 = vperm.xlu1 %3301, %v148_v19   ;;  %421 = vperm.xlu0 %3300, %v147_v20   ;;  %v151_v26 = vld [vmem:[%s4949_s2 + $0x1c0] sm:$0xff]  ;;  %v154_v27 = vld [vmem:[%s4949_s2 + $0x1d8] sm:$0xff]  ;;  %v153_v28 = vld [vmem:[%s4949_s2 + $0x1d0] sm:$0xff]  ;;  %s3483_s8 = scalar_lea.vmem %s2892_s30, 32  ;;  %p3484_p1 = scmp.lt.s32.totalorder %s2892_s30, %s2892_s30 }
  0x6b   :  { %v3332_v29 = vld [vmem:[%s4948_s1 + $0xe8] sm:$0xff]   ;;  %v3333_v30 = vld [vmem:[%s4948_s1 + $0xf0] sm:$0xff]   ;;  %v155_v32 = vld [vmem:[%s4949_s2 + $0x1e0] sm:$0xff] }
  0x6c   :  { %v156_v31 = vld [vmem:[%s4949_s2 + $0x1e8] sm:$0xff]  ;;  %v158_v33 = vld [vmem:[%s4949_s2 + $0x1f8] sm:$0xff]  ;;  %v157_v34 = vld [vmem:[%s4949_s2 + $0x1f0] sm:$0xff]  ;;  %s3479_s2 = scalar_lea.vmem %s2892_s30, 16 }
  0x6d   :  { %v3334_v35 = vld [vmem:[%s4948_s1 + $0xf8] sm:$0xff]   ;;  %v1227_v36 = vld [vmem:[%s4951_s4 + $0x8] sm:$0xff]  ;;  %v1226_v37 = vld [vmem:[%s4951_s4] sm:$0xff]  ;;  %p3480_p0 = scmp.ne.s32.totalorder %s2892_s30, %s3479_s2  ;;  %p3485_p2 = scmp.lt.s32.totalorder %s3483_s8, %s3479_s2 }
  0x6e   :  { %436 = vperm.xlu1 %3301, %v150_v21   ;;  %431 = vperm.xlu0 %3300, %v149_v22   ;;  %v1229_v38 = vld [vmem:[%s4951_s4 + $0x18] sm:$0xff]  ;;  %v1228_v39 = vld [vmem:[%s4951_s4 + $0x10] sm:$0xff]  ;;  %v1231_v40 = vld [vmem:[%s4951_s4 + $0x28] sm:$0xff] }
  0x6f   :  { %3148 = vmatmul.mubr.msk.bf16.gmra.mrb[52].mxu0 %vm644_vm1, %v3330_v23  ;;  %v1230_v41 = vld [vmem:[%s4951_s4 + $0x20] sm:$0xff]  ;;  %v1233_v44 = vld [vmem:[%s4951_s4 + $0x38] sm:$0xff]  ;;  %v1232_v45 = vld [vmem:[%s4951_s4 + $0x30] sm:$0xff]  ;;  %p3486_p3 = por %p3485_p2, %p3484_p1 }
  0x70   :  { %3151 = vmatprep.mubr.msk.bf16.mxu0 %vm644_vm1, %v3331_v24  ;;  %v1235_v47 = vld [vmem:[%s4951_s4 + $0x48] sm:$0xff]  ;;  %v1234_v48 = vld [vmem:[%s4951_s4 + $0x40] sm:$0xff]  ;;  %v1237_v50 = vld [vmem:[%s4951_s4 + $0x58] sm:$0xff] }
  0x71   :  { %v1236_v51 = vld [vmem:[%s4951_s4 + $0x50] sm:$0xff]  ;;  %v1239_v54 = vld [vmem:[%s4951_s4 + $0x68] sm:$0xff]  ;;  %v1238_v55 = vld [vmem:[%s4951_s4 + $0x60] sm:$0xff]  ;;  %p3487_p4 = pnand %p3486_p3, %p3480_p0 }
  0x72   :  { %446 = vperm.xlu1 %3301, %v152_v25   ;;  %441 = vperm.xlu0 %3300, %v151_v26   ;;  %v1241_v57 = vld [vmem:[%s4951_s4 + $0x78] sm:$0xff]  ;;  %v1240_v58 = vld [vmem:[%s4951_s4 + $0x70] sm:$0xff]  ;;  %v1243_v60 = vld [vmem:[%s4951_s4 + $0x88] sm:$0xff] }
  0x73   :  { %v1242_v61 = vld [vmem:[%s4951_s4 + $0x80] sm:$0xff]  ;;  %v1245_v1 = vld [vmem:[%s4951_s4 + $0x98] sm:$0xff]  ;;  %v1244_v3 = vld [vmem:[%s4951_s4 + $0x90] sm:$0xff] }
  0x74   :  { %v3337_v63 = vld [vmem:[%s4950_s3 + $0x4] ss:$16 sps:$4 sm:$0xff]   ;;  %v1247_v5 = vld [vmem:[%s4951_s4 + $0xa8] sm:$0xff]  ;;  %v1249_v8 = vld [vmem:[%s4951_s4 + $0xb8] sm:$0xff] }
  0x75   :  { %2026 = vmatprep.mubr.bf16.mxu1 %v3337_v63  ;;  %v1246_v6 = vld [vmem:[%s4951_s4 + $0xa0] sm:$0xff]  ;;  %v1248_v9 = vld [vmem:[%s4951_s4 + $0xb0] sm:$0xff]  ;;  %v1251_v12 = vld [vmem:[%s4951_s4 + $0xc8] sm:$0xff] }
  0x76   :  { %456 = vperm.xlu1 %3301, %v154_v27   ;;  %451 = vperm.xlu0 %3300, %v153_v28   ;;  %v1250_v13 = vld [vmem:[%s4951_s4 + $0xc0] sm:$0xff]  ;;  %v1253_v15 = vld [vmem:[%s4951_s4 + $0xd8] sm:$0xff]  ;;  %v1252_v16 = vld [vmem:[%s4951_s4 + $0xd0] sm:$0xff] }
  0x77   :  { %3152 = vmatmul.mubr.msk.bf16.gmra.mrb[56].mxu0 %vm644_vm1, %v3332_v29  ;;  %v1255_v18 = vld [vmem:[%s4951_s4 + $0xe8] sm:$0xff]  ;;  %v1254_v19 = vld [vmem:[%s4951_s4 + $0xe0] sm:$0xff]  ;;  %v1257_v22 = vld [vmem:[%s4951_s4 + $0xf8] sm:$0xff] }
  0x78   :  { %3155 = vmatprep.mubr.msk.bf16.mxu0 %vm644_vm1, %v3333_v30  ;;  %v1256_v23 = vld [vmem:[%s4951_s4 + $0xf0] sm:$0xff]  ;;  %v1259_v25 = vld [vmem:[%s4951_s4 + $0x108] sm:$0xff]  ;;  %v1258_v26 = vld [vmem:[%s4951_s4 + $0x100] sm:$0xff] }
  0x79   :  { %v1261_v28 = vld [vmem:[%s4951_s4 + $0x118] sm:$0xff]  ;;  %v1260_v29 = vld [vmem:[%s4951_s4 + $0x110] sm:$0xff] }
  0x7a   :  { %466 = vperm.xlu1 %3301, %v156_v31   ;;  %461 = vperm.xlu0 %3300, %v155_v32   ;;  %v1263_v32 = vld [vmem:[%s4951_s4 + $0x128] sm:$0xff] }
  0x7e   :  { %476 = vperm.xlu1 %3301, %v158_v33   ;;  %471 = vperm.xlu0 %3300, %v157_v34   ;;  %v1262_v33 = vld [vmem:[%s4951_s4 + $0x120] sm:$0xff] }
  0x7f   :  { %3156 = vmatmul.mubr.msk.bf16.gmra.mrb[60].mxu0 %vm644_vm1, %v3334_v35  ;;  %v1265_v35 = vld [vmem:[%s4951_s4 + $0x138] sm:$0xff] }
  0x81   :  { %v3890_v42 = vpop.permute.xlu1 %171  ;;  %v3892_v43 = vpop.permute.xlu0 %161 }
  0x82   :  { %1281 = vperm.xlu1 %3301, %v1227_v36   ;;  %1276 = vperm.xlu0 %3300, %v1226_v37   ;;  %v1264_v36 = vld [vmem:[%s4951_s4 + $0x130] sm:$0xff] }
  0x85   :  { %v3900_v46 = vpop.permute.xlu1 %176  ;;  %v3908_v49 = vpop.permute.xlu0 %166 }
  0x86   :  { %1291 = vperm.xlu1 %3301, %v1229_v38   ;;  %1286 = vperm.xlu0 %3300, %v1228_v39   ;;  %v1267_v38 = vld [vmem:[%s4951_s4 + $0x148] sm:$0xff]  ;;  %v1266_v39 = vld [vmem:[%s4951_s4 + $0x140] sm:$0xff] }
  0x89   :  { %v3916_v52 = vpop.permute.xlu1 %186  ;;  %v3918_v53 = vpop.permute.xlu0 %181 }
  0x8a   :  { %1301 = vperm.xlu1 %3301, %v1231_v40   ;;  %1296 = vperm.xlu0 %3300, %v1230_v41  }
  0x8d   :  { %v3926_v56 = vpop.permute.xlu1 %196  ;;  %v3934_v59 = vpop.permute.xlu0 %191 }
  0x8e   :  { %1311 = vperm.xlu1 %3301, %v1233_v44   ;;  %1306 = vperm.xlu0 %3300, %v1232_v45   ;;  %v1269_v44 = vld [vmem:[%s4951_s4 + $0x158] sm:$0xff]  ;;  %v1268_v45 = vld [vmem:[%s4951_s4 + $0x150] sm:$0xff] }
  0x91   :  { %v3942_v62 = vpop.permute.xlu1 %206  ;;  %v3947_v0 = vpop.permute.xlu0 %201 }
  0x92   :  { %1321 = vperm.xlu1 %3301, %v1235_v47   ;;  %1316 = vperm.xlu0 %3300, %v1234_v48   ;;  %v1271_v48 = vld [vmem:[%s4951_s4 + $0x168] sm:$0xff] }
  0x95   :  { %v3955_v4 = vpop.permute.xlu1 %216  ;;  %v3963_v7 = vpop.permute.xlu0 %211 }
  0x96   :  { %1331 = vperm.xlu1 %3301, %v1237_v50   ;;  %1326 = vperm.xlu0 %3300, %v1236_v51   ;;  %v1270_v50 = vld [vmem:[%s4951_s4 + $0x160] sm:$0xff] }
  0x99   :  { %v3971_v10 = vpop.permute.xlu1 %226  ;;  %v3973_v11 = vpop.permute.xlu0 %221 }
  0x9a   :  { %1341 = vperm.xlu1 %3301, %v1239_v54   ;;  %1336 = vperm.xlu0 %3300, %v1238_v55  }
  0x9d   :  { %v3981_v14 = vpop.permute.xlu1 %236  ;;  %v3989_v17 = vpop.permute.xlu0 %231 }
  0x9e   :  { %1351 = vperm.xlu1 %3301, %v1241_v57   ;;  %1346 = vperm.xlu0 %3300, %v1240_v58   ;;  %v1273_v58 = vld [vmem:[%s4951_s4 + $0x178] sm:$0xff] }
  0xa1   :  { %v3997_v20 = vpop.permute.xlu1 %246  ;;  %v3999_v21 = vpop.permute.xlu0 %241 }
  0xa2   :  { %1361 = vperm.xlu1 %3301, %v1243_v60   ;;  %1356 = vperm.xlu0 %3300, %v1242_v61   ;;  %v1272_v60 = vld [vmem:[%s4951_s4 + $0x170] sm:$0xff] }
  0xa5   :  { %v4007_v24 = vpop.permute.xlu1 %256  ;;  %v4015_v27 = vpop.permute.xlu0 %251 }
  0xa6   :  { %1371 = vperm.xlu1 %3301, %v1245_v1   ;;  %1366 = vperm.xlu0 %3300, %v1244_v3  }
  0xa9   :  { %v4023_v30 = vpop.permute.xlu1 %266  ;;  %v4025_v31 = vpop.permute.xlu0 %261 }
  0xaa   :  { %1381 = vperm.xlu1 %3301, %v1247_v5   ;;  %1376 = vperm.xlu0 %3300, %v1246_v6  }
  0xad   :  { %v4033_v34 = vpop.permute.xlu1 %276  ;;  %v4041_v37 = vpop.permute.xlu0 %271 }
  0xae   :  { %1391 = vperm.xlu1 %3301, %v1249_v8   ;;  %1386 = vperm.xlu0 %3300, %v1248_v9  }
  0xb1   :  { %v4049_v40 = vpop.permute.xlu1 %286  ;;  %v4051_v41 = vpop.permute.xlu0 %281 }
  0xb2   :  { %1401 = vperm.xlu1 %3301, %v1251_v12   ;;  %1396 = vperm.xlu0 %3300, %v1250_v13   ;;  %v2493_v12 = vld [vmem:[%s4952_s5 + $0x8] sm:$0xff]  ;;  %v2492_v13 = vld [vmem:[%s4952_s5] sm:$0xff] }
  0xb5   :  { %v4059_v47 = vpop.permute.xlu1 %296  ;;  %v4067_v51 = vpop.permute.xlu0 %291 }
  0xb6   :  { %1411 = vperm.xlu1 %3301, %v1253_v15   ;;  %1406 = vperm.xlu0 %3300, %v1252_v16  }
  0xb9   :  { %v4076_v63 = vpop.permute.xlu1 %306  ;;  %v4080_v5 = vpop.permute.xlu0 %301 }
  0xba   :  { %1421 = vperm.xlu1 %3301, %v1255_v18   ;;  %1416 = vperm.xlu0 %3300, %v1254_v19   ;;  %v3363_v18 = vld [vmem:[%s4950_s3 + $0xc] ss:$16 sps:$4 sm:$0xff]  }
  0xbb   :  { %2251 = vmatprep.mubr.bf16.mxu0 %v3363_v18 }
  0xbd   :  { %v4092_v19 = vpop.permute.xlu1 %316 }
  0xbe   :  { %1431 = vperm.xlu1 %3301, %v1257_v22   ;;  %1426 = vperm.xlu0 %3300, %v1256_v23  }
  0xc2   :  { %1441 = vperm.xlu1 %3301, %v1259_v25   ;;  %1436 = vperm.xlu0 %3300, %v1258_v26   ;;  %v2495_v25 = vld [vmem:[%s4952_s5 + $0x18] sm:$0xff]  ;;  %v2494_v26 = vld [vmem:[%s4952_s5 + $0x10] sm:$0xff] }
  0xc6   :  { %1451 = vperm.xlu1 %3301, %v1261_v28   ;;  %1446 = vperm.xlu0 %3300, %v1260_v29   ;;  %v4101_v28 = vpop.permute.xlu0 %311 }
  0xca   :  { %1461 = vperm.xlu1 %3301, %v1263_v32   ;;  %1456 = vperm.xlu0 %3300, %v1262_v33  }
  0xce   :  { %1471 = vperm.xlu1 %3301, %v1265_v35   ;;  %1466 = vperm.xlu0 %3300, %v1264_v36  }
  0xd2   :  { %1481 = vperm.xlu1 %3301, %v1267_v38   ;;  %1476 = vperm.xlu0 %3300, %v1266_v39   ;;  %v2497_v39 = vld [vmem:[%s4952_s5 + $0x28] sm:$0xff] }
  0xd6   :  { %1491 = vperm.xlu1 %3301, %v1269_v44   ;;  %1486 = vperm.xlu0 %3300, %v1268_v45   ;;  %v4113_v44 = vpop.permute.xlu1 %326 }
  0xda   :  { %1501 = vperm.xlu1 %3301, %v1271_v48   ;;  %1496 = vperm.xlu0 %3300, %v1270_v50   ;;  %v3097_v54 = vpop.f32.mrb[0].mxu0  ;;  %v4115_v50 = vpop.permute.xlu0 %321 }
  0xdb   :  { %v788_v55 = vadd.f32 %v3097_v54, %v3890_v42  ;;  %v779_v57 = vpop.f32.mrb[1].mxu0 }
  0xdc   :  { %v3098_v61 = vpop.f32.mrb[2].mxu0  ;;  %v780_v1 = vadd.f32 %v779_v57, %v3892_v43 }
  0xdd   :  { %v791_v3 = vadd.f32 %v3098_v61, %v3900_v46  ;;  %v782_v6 = vpop.f32.mrb[3].mxu0  ;;  %v1036_v42 = vmax.f32 %v788_v55, 0.0 }
  0xde   :  { %1511 = vperm.xlu1 %3301, %v1273_v58   ;;  %1506 = vperm.xlu0 %3300, %v1272_v60   ;;  %v783_v9 = vadd.f32 %v782_v6, %v3908_v49  ;;  %v1034_v43 = vmax.f32 %v780_v1, 0.0  ;;  %v2499_v58 = vld [vmem:[%s4952_s5 + $0x38] sm:$0xff]  ;;  %v2498_v60 = vld [vmem:[%s4952_s5 + $0x30] sm:$0xff] }
  0xdf   :  { %v1037_v8 = vmax.f32 %v791_v3, 0.0 }
  0xe0   :  { %v1035_v46 = vmax.f32 %v783_v9, 0.0 }
  0xe1   :  { %v1195_v15 = vpack.c.bf16 %v1037_v8, %v1036_v42 }
  0xe2   :  { %2547 = vperm.xlu1 %3301, %v2493_v12   ;;  %2542 = vperm.xlu0 %3300, %v2492_v13   ;;  %v3101_v16 = vpop.f32.mrb[4].mxu0  ;;  %v1194_v23 = vpack.c.bf16 %v1035_v46, %v1034_v43  ;;  %v2501_v12 = vld [vmem:[%s4952_s5 + $0x48] sm:$0xff] }
  0xe3   :  { %v804_v49 = vadd.f32 %v3101_v16, %v3934_v59  ;;  %v795_v22 = vpop.f32.mrb[5].mxu0 }
  0xe4   :  { %v3102_v29 = vpop.f32.mrb[6].mxu0  ;;  %v796_v32 = vadd.f32 %v795_v22, %v3918_v53  ;;  %1995 = vmatpush1.bf16.msra.mxu1 %v1194_v23  ;;  %v2496_v53 = vld [vmem:[%s4952_s5 + $0x20] sm:$0xff]  ;;  %v2502_v22 = vld [vmem:[%s4952_s5 + $0x50] sm:$0xff] }
  0xe5   :  { %v807_v33 = vadd.f32 %v3102_v29, %v3926_v56  ;;  %v798_v59 = vpop.f32.mrb[7].mxu0  ;;  %v1040_v35 = vmax.f32 %v804_v49, 0.0  ;;  %1996 = vmatprep.subr.bf16.mxu1 %v3503_v2  ;;  %v2503_v49 = vld [vmem:[%s4952_s5 + $0x58] sm:$0xff] }
  0xe6   :  { %2557 = vperm.xlu1 %3301, %v2495_v25   ;;  %2552 = vperm.xlu0 %3300, %v2494_v26   ;;  %v799_v38 = vadd.f32 %v798_v59, %v3916_v52  ;;  %v1038_v56 = vmax.f32 %v796_v32, 0.0 }
  0xe7   :  { %v1041_v36 = vmax.f32 %v807_v33, 0.0 }
  0xe8   :  { %v1039_v48 = vmax.f32 %v799_v38, 0.0  ;;  %1997 = vmatpush1.bf16.msra.mxu1 %v1195_v15 }
  0xe9   :  { %v1197_v45 = vpack.c.bf16 %v1041_v36, %v1040_v35  ;;  %1998 = vmatprep.subr.bf16.mxu1 %v3503_v2  ;;  %v2505_v36 = vld [vmem:[%s4952_s5 + $0x68] sm:$0xff] }
  0xea   :  { %2567 = vperm.xlu1 %3301, %v2497_v39   ;;  %2562 = vperm.xlu0 %3300, %v2496_v53   ;;  %v3105_v52 = vpop.f32.mrb[8].mxu0  ;;  %v1196_v54 = vpack.c.bf16 %v1039_v48, %v1038_v56 }
  0xeb   :  { %v820_v55 = vadd.f32 %v3105_v52, %v3963_v7  ;;  %v811_v57 = vpop.f32.mrb[9].mxu0  ;;  %v4127_v7 = vpop.permute.xlu1 %336  ;;  %v2507_v52 = vld [vmem:[%s4952_s5 + $0x78] sm:$0xff] }
  0xec   :  { %v3106_v61 = vpop.f32.mrb[10].mxu0  ;;  %v812_v1 = vadd.f32 %v811_v57, %v3947_v0  ;;  %1999 = vmatpush1.bf16.msra.mxu1 %v1196_v54  ;;  %v2500_v0 = vld [vmem:[%s4952_s5 + $0x40] sm:$0xff]  ;;  %v2506_v54 = vld [vmem:[%s4952_s5 + $0x70] sm:$0xff] }
  0xed   :  { %v823_v3 = vadd.f32 %v3106_v61, %v3955_v4  ;;  %v814_v6 = vpop.f32.mrb[11].mxu0  ;;  %v1044_v42 = vmax.f32 %v820_v55, 0.0  ;;  %2000 = vmatprep.subr.bf16.mxu1 %v3503_v2  ;;  %v4137_v4 = vpop.permute.xlu0 %331 }
  0xee   :  { %2577 = vperm.xlu1 %3301, %v2499_v58   ;;  %2572 = vperm.xlu0 %3300, %v2498_v60   ;;  %v815_v9 = vadd.f32 %v814_v6, %v3942_v62  ;;  %v1042_v13 = vmax.f32 %v812_v1, 0.0  ;;  %v2509_v6 = vld [vmem:[%s4952_s5 + $0x88] sm:$0xff] }
  0xef   :  { %v1045_v8 = vmax.f32 %v823_v3, 0.0  ;;  %v4147_v25 = vpop.permute.xlu1 %346 }
  0xf0   :  { %v1043_v15 = vmax.f32 %v815_v9, 0.0  ;;  %2001 = vmatpush1.bf16.msra.mxu1 %v1197_v45 }
  0xf1   :  { %v1199_v43 = vpack.c.bf16 %v1045_v8, %v1044_v42  ;;  %2002 = vmatprep.subr.bf16.mxu1 %v3503_v2 }
  0xf2   :  { %2587 = vperm.xlu1 %3301, %v2501_v12   ;;  %2582 = vperm.xlu0 %3300, %v2500_v0   ;;  %v3109_v46 = vpop.f32.mrb[12].mxu0  ;;  %v1198_v62 = vpack.c.bf16 %v1043_v15, %v1042_v13  ;;  %v2511_v15 = vld [vmem:[%s4952_s5 + $0x98] sm:$0xff] }
  0xf3   :  { %v836_v16 = vadd.f32 %v3109_v46, %v3989_v17  ;;  %v827_v18 = vpop.f32.mrb[13].mxu0  ;;  %v4151_v17 = vpop.permute.xlu0 %341  ;;  %v2510_v46 = vld [vmem:[%s4952_s5 + $0x90] sm:$0xff] }
  0xf4   :  { %v3110_v23 = vpop.f32.mrb[14].mxu0  ;;  %v828_v26 = vadd.f32 %v827_v18, %v3973_v11  ;;  %2003 = vmatpush1.bf16.msra.mxu1 %v1198_v62  ;;  %v2504_v11 = vld [vmem:[%s4952_s5 + $0x60] sm:$0xff]  ;;  %v4161_v56 = vpop.permute.xlu1 %356 }
  0xf5   :  { %v839_v29 = vadd.f32 %v3110_v23, %v3981_v14  ;;  %v830_v32 = vpop.f32.mrb[15].mxu0  ;;  %v1048_v33 = vmax.f32 %v836_v16, 0.0  ;;  %2004 = vmatprep.subr.bf16.mxu1 %v3503_v2 }
  0xf6   :  { %2597 = vperm.xlu1 %3301, %v2503_v49   ;;  %2592 = vperm.xlu0 %3300, %v2502_v22   ;;  %v831_v35 = vadd.f32 %v830_v32, %v3971_v10  ;;  %v1046_v14 = vmax.f32 %v828_v26, 0.0 }
  0xf7   :  { %v1049_v59 = vmax.f32 %v839_v29, 0.0  ;;  %v4171_v55 = vpop.permute.xlu0 %351  ;;  %v2513_v29 = vld [vmem:[%s4952_s5 + $0xa8] sm:$0xff] }
  0xf8   :  { %v1047_v39 = vmax.f32 %v831_v35, 0.0  ;;  %2005 = vmatpush1.bf16.msra.mxu1 %v1199_v43  ;;  %v4183_v42 = vpop.permute.xlu1 %366 }
  0xf9   :  { %v1201_v38 = vpack.c.bf16 %v1049_v59, %v1048_v33  ;;  %2006 = vmatprep.subr.bf16.mxu1 %v3503_v2 }
  0xfa   :  { %2607 = vperm.xlu1 %3301, %v2505_v36   ;;  %2602 = vperm.xlu0 %3300, %v2504_v11   ;;  %v3113_v53 = vpop.f32.mrb[16].mxu0  ;;  %v1200_v10 = vpack.c.bf16 %v1047_v39, %v1046_v14  ;;  %v2515_v14 = vld [vmem:[%s4952_s5 + $0xb8] sm:$0xff] }
  0xfb   :  { %v852_v45 = vadd.f32 %v3113_v53, %v4015_v27  ;;  %v843_v48 = vpop.f32.mrb[17].mxu0  ;;  %v4185_v12 = vpop.permute.xlu0 %361 }
  0xfc   :  { %v3114_v57 = vpop.f32.mrb[18].mxu0  ;;  %v844_v58 = vadd.f32 %v843_v48, %v3999_v21  ;;  %2007 = vmatpush1.bf16.msra.mxu1 %v1200_v10  ;;  %v2508_v21 = vld [vmem:[%s4952_s5 + $0x80] sm:$0xff] }
  0xfd   :  { %v855_v60 = vadd.f32 %v3114_v57, %v4007_v24  ;;  %v846_v27 = vpop.f32.mrb[19].mxu0  ;;  %v1052_v61 = vmax.f32 %v852_v45, 0.0  ;;  %2008 = vmatprep.subr.bf16.mxu1 %v3503_v2 }
  0xfe   :  { %2617 = vperm.xlu1 %3301, %v2507_v52   ;;  %2612 = vperm.xlu0 %3300, %v2506_v54   ;;  %v847_v3 = vadd.f32 %v846_v27, %v3997_v20  ;;  %v1050_v24 = vmax.f32 %v844_v58, 0.0  ;;  %v2517_v58 = vld [vmem:[%s4952_s5 + $0xc8] sm:$0xff] }
  0xff   :  { %v1053_v1 = vmax.f32 %v855_v60, 0.0 }
 0x100   :  { %v1051_v9 = vmax.f32 %v847_v3, 0.0  ;;  %2009 = vmatpush1.bf16.msra.mxu1 %v1201_v38  ;;  %v2514_v38 = vld [vmem:[%s4952_s5 + $0xb0] sm:$0xff] }
 0x101   :  { %v1203_v8 = vpack.c.bf16 %v1053_v1, %v1052_v61  ;;  %2010 = vmatprep.subr.bf16.mxu1 %v3503_v2 }
 0x102   :  { %2627 = vperm.xlu1 %3301, %v2509_v6   ;;  %2622 = vperm.xlu0 %3300, %v2508_v21   ;;  %v3117_v20 = vpop.f32.mrb[20].mxu0  ;;  %v1202_v0 = vpack.c.bf16 %v1051_v9, %v1050_v24  ;;  %v2519_v21 = vld [vmem:[%s4952_s5 + $0xd8] sm:$0xff]  ;;  %v2518_v24 = vld [vmem:[%s4952_s5 + $0xd0] sm:$0xff] }
 0x103   :  { %v868_v13 = vadd.f32 %v3117_v20, %v4041_v37  ;;  %v859_v43 = vpop.f32.mrb[21].mxu0  ;;  %v4197_v37 = vpop.permute.xlu1 %376 }
 0x104   :  { %v3118_v62 = vpop.f32.mrb[22].mxu0  ;;  %v860_v16 = vadd.f32 %v859_v43, %v4025_v31  ;;  %2011 = vmatpush1.bf16.msra.mxu1 %v1202_v0  ;;  %v2512_v31 = vld [vmem:[%s4952_s5 + $0xa0] sm:$0xff] }
 0x105   :  { %v871_v18 = vadd.f32 %v3118_v62, %v4033_v34  ;;  %v862_v49 = vpop.f32.mrb[23].mxu0  ;;  %v1056_v22 = vmax.f32 %v868_v13, 0.0  ;;  %2012 = vmatprep.subr.bf16.mxu1 %v3503_v2  ;;  %v4207_v34 = vpop.permute.xlu0 %371 }
 0x106   :  { %2637 = vperm.xlu1 %3301, %v2511_v15   ;;  %2632 = vperm.xlu0 %3300, %v2510_v46   ;;  %v863_v26 = vadd.f32 %v862_v49, %v4023_v30  ;;  %v1054_v32 = vmax.f32 %v860_v16, 0.0  ;;  %v2521_v46 = vld [vmem:[%s4952_s5 + $0xe8] sm:$0xff] }
 0x107   :  { %v1057_v23 = vmax.f32 %v871_v18, 0.0  ;;  %v4217_v53 = vpop.permute.xlu1 %386 }
 0x108   :  { %v1055_v59 = vmax.f32 %v863_v26, 0.0  ;;  %2013 = vmatpush1.bf16.msra.mxu1 %v1203_v8 }
 0x109   :  { %v1205_v33 = vpack.c.bf16 %v1057_v23, %v1056_v22  ;;  %2014 = vmatprep.subr.bf16.mxu1 %v3503_v2 }
 0x10a   :  { %2647 = vperm.xlu1 %3301, %v2513_v29   ;;  %2642 = vperm.xlu0 %3300, %v2512_v31   ;;  %v3121_v35 = vpop.f32.mrb[24].mxu0  ;;  %v1204_v30 = vpack.c.bf16 %v1055_v59, %v1054_v32  ;;  %v2523_v29 = vld [vmem:[%s4952_s5 + $0xf8] sm:$0xff]  ;;  %v2522_v31 = vld [vmem:[%s4952_s5 + $0xf0] sm:$0xff] }
 0x10b   :  { %v884_v36 = vadd.f32 %v3121_v35, %v4067_v51  ;;  %v875_v11 = vpop.f32.mrb[25].mxu0  ;;  %v4221_v51 = vpop.permute.xlu0 %381 }
 0x10c   :  { %v3122_v39 = vpop.f32.mrb[26].mxu0  ;;  %v876_v10 = vadd.f32 %v875_v11, %v4051_v41  ;;  %2015 = vmatpush1.bf16.msra.mxu1 %v1204_v30  ;;  %v2516_v41 = vld [vmem:[%s4952_s5 + $0xc0] sm:$0xff]  ;;  %v4231_v1 = vpop.permute.xlu1 %396 }
 0x10d   :  { %v887_v45 = vadd.f32 %v3122_v39, %v4059_v47  ;;  %v878_v48 = vpop.f32.mrb[27].mxu0  ;;  %v1060_v52 = vmax.f32 %v884_v36, 0.0  ;;  %2016 = vmatprep.subr.bf16.mxu1 %v3503_v2 }
 0x10e   :  { %2657 = vperm.xlu1 %3301, %v2515_v14   ;;  %2652 = vperm.xlu0 %3300, %v2514_v38   ;;  %v879_v57 = vadd.f32 %v878_v48, %v4049_v40  ;;  %v1058_v47 = vmax.f32 %v876_v10, 0.0  ;;  %v2525_v14 = vld [vmem:[%s4952_s5 + $0x108] sm:$0xff]  ;;  %v3335_v38 = vld [vmem:[%s4950_s3] ss:$16 sps:$4 sm:$0xff]  }
 0x10f   :  { %v1061_v54 = vmax.f32 %v887_v45, 0.0  ;;  %v4241_v8 = vpop.permute.xlu0 %391 }
 0x110   :  { %v1059_v27 = vmax.f32 %v879_v57, 0.0  ;;  %2017 = vmatpush1.bf16.msra.mxu1 %v1205_v33  ;;  %v4253_v62 = vpop.permute.xlu1 %406  ;;  %v2527_v57 = vld [vmem:[%s4952_s5 + $0x118] sm:$0xff] }
 0x111   :  { %v1207_v60 = vpack.c.bf16 %v1061_v54, %v1060_v52  ;;  %2018 = vmatprep.subr.bf16.mxu1 %v3503_v2 }
 0x112   :  { %2667 = vperm.xlu1 %3301, %v2517_v58   ;;  %2662 = vperm.xlu0 %3300, %v2516_v41   ;;  %v3125_v61 = vpop.f32.mrb[28].mxu0  ;;  %v1206_v40 = vpack.c.bf16 %v1059_v27, %v1058_v47  ;;  %v2526_v58 = vld [vmem:[%s4952_s5 + $0x110] sm:$0xff] }
 0x113   :  { %v900_v3 = vadd.f32 %v3125_v61, %v4101_v28  ;;  %v891_v6 = vpop.f32.mrb[29].mxu0  ;;  %v4255_v49 = vpop.permute.xlu0 %401  ;;  %v3338_v47 = vld [vmem:[%s4950_s3 + $0x24] ss:$16 sps:$4 sm:$0xff]  }
 0x114   :  { %v3126_v9 = vpop.f32.mrb[30].mxu0  ;;  %v892_v20 = vadd.f32 %v891_v6, %v4080_v5  ;;  %2019 = vmatpush1.bf16.msra.mxu1 %v1206_v40  ;;  %v2520_v5 = vld [vmem:[%s4952_s5 + $0xe0] sm:$0xff] }
 0x115   :  { %v903_v0 = vadd.f32 %v3126_v9, %v4092_v19  ;;  %v894_v28 = vpop.f32.mrb[31].mxu0  ;;  %v1064_v13 = vmax.f32 %v900_v3, 0.0  ;;  %2020 = vmatprep.subr.bf16.mxu1 %v3503_v2 }
 0x116   :  { %2677 = vperm.xlu1 %3301, %v2519_v21   ;;  %2672 = vperm.xlu0 %3300, %v2518_v24   ;;  %v895_v15 = vadd.f32 %v894_v28, %v4076_v63  ;;  %v1062_v19 = vmax.f32 %v892_v20, 0.0  ;;  %v3340_v24 = vld [vmem:[%s4950_s3 + $0x20] ss:$16 sps:$4 sm:$0xff]  }
 0x117   :  { %v1065_v43 = vmax.f32 %v903_v0, 0.0 }
 0x118   :  { %v1063_v18 = vmax.f32 %v895_v15, 0.0  ;;  %2021 = vmatpush1.bf16.msra.mxu1 %v1207_v60 }
 0x119   :  { %v1209_v16 = vpack.c.bf16 %v1065_v43, %v1064_v13  ;;  %2022 = vmatprep.subr.bf16.mxu1 %v3503_v2 }
 0x11a   :  { %2687 = vperm.xlu1 %3301, %v2521_v46   ;;  %2682 = vperm.xlu0 %3300, %v2520_v5   ;;  %v3129_v63 = vpop.f32.mrb[32].mxu0  ;;  %v1208_v22 = vpack.c.bf16 %v1063_v18, %v1062_v19  ;;  %v2531_v46 = vld [vmem:[%s4952_s5 + $0x138] sm:$0xff]  ;;  %v2530_v5 = vld [vmem:[%s4952_s5 + $0x130] sm:$0xff] }
 0x11b   :  { %v916_v23 = vadd.f32 %v3129_v63, %v4137_v4  ;;  %v907_v26 = vpop.f32.mrb[33].mxu0  ;;  %v4267_v4 = vpop.permute.xlu1 %416 }
 0x11c   :  { %v3130_v32 = vpop.f32.mrb[34].mxu0  ;;  %v908_v33 = vadd.f32 %v907_v26, %v4115_v50  ;;  %2023 = vmatpush1.bf16.msra.mxu1 %v1208_v22  ;;  %v2524_v50 = vld [vmem:[%s4952_s5 + $0x100] sm:$0xff] }
 0x11d   :  { %v919_v59 = vadd.f32 %v3130_v32, %v4127_v7  ;;  %v910_v35 = vpop.f32.mrb[35].mxu0  ;;  %v1068_v30 = vmax.f32 %v916_v23, 0.0  ;;  %2024 = vmatprep.subr.bf16.mxu1 %v3503_v2  ;;  %v4277_v7 = vpop.permute.xlu0 %411 }
 0x11e   :  { %2697 = vperm.xlu1 %3301, %v2523_v29   ;;  %2692 = vperm.xlu0 %3300, %v2522_v31   ;;  %v911_v11 = vadd.f32 %v910_v35, %v4113_v44  ;;  %v1066_v39 = vmax.f32 %v908_v33, 0.0  ;;  %v2533_v31 = vld [vmem:[%s4952_s5 + $0x148] sm:$0xff] }
 0x11f   :  { %v1069_v36 = vmax.f32 %v919_v59, 0.0  ;;  %v4293_v60 = vpop.permute.xlu1 %426 }
 0x120   :  { %v1067_v45 = vmax.f32 %v911_v11, 0.0  ;;  %2025 = vmatpush1.bf16.msra.mxu1 %v1209_v16 }
 0x121   :  { %v1211_v10 = vpack.c.bf16 %v1069_v36, %v1068_v30  ;;  %3159 = vmatprep.subr.bf16.mxu1 %v3503_v2  ;;  %v4297_v61 = vpop.permute.xlu0 %421 }
 0x122   :  { %2707 = vperm.xlu1 %3301, %v2525_v14   ;;  %2702 = vperm.xlu0 %3300, %v2524_v50   ;;  %v3133_v44 = vpop.f32.mrb[36].mxu0  ;;  %v1210_v48 = vpack.c.bf16 %v1067_v45, %v1066_v39  ;;  %v2535_v50 = vld [vmem:[%s4952_s5 + $0x158] sm:$0xff] }
 0x123   :  { %v932_v52 = vadd.f32 %v3133_v44, %v4171_v55  ;;  %v923_v54 = vpop.f32.mrb[37].mxu0  ;;  %2027 = vmatmul.mubr.bf16.vlgmr.msra.gmra.mrb[0].mxu1 %v3335_v38  ;;  %v4311_v28 = vpop.permute.xlu1 %436  ;;  %v2534_v38 = vld [vmem:[%s4952_s5 + $0x150] sm:$0xff] }
 0x124   :  { %v3134_v41 = vpop.f32.mrb[38].mxu0  ;;  %v924_v55 = vadd.f32 %v923_v54, %v4151_v17  ;;  %2220 = vmatpush1.bf16.msra.mxu0 %v1210_v48  ;;  %3175 = vmatpush1.bf16.msra.mxu1 %v1210_v48  ;;  %v2529_v17 = vld [vmem:[%s4952_s5 + $0x128] sm:$0xff] }
 0x125   :  { %v935_v27 = vadd.f32 %v3134_v41, %v4161_v56  ;;  %v926_v40 = vpop.f32.mrb[39].mxu0  ;;  %v1072_v3 = vmax.f32 %v932_v52, 0.0  ;;  %2221 = vmatprep.subr.bf16.mxu0 %v3503_v2  ;;  %3160 = vmatprep.subr.bf16.mxu1 %v3503_v2  ;;  %v2528_v56 = vld [vmem:[%s4952_s5 + $0x120] sm:$0xff]  ;;  %v4322_v19 = vpop.permute.xlu0 %431 }
 0x126   :  { %2717 = vperm.xlu1 %3301, %v2527_v57   ;;  %2712 = vperm.xlu0 %3300, %v2526_v58   ;;  %v927_v21 = vadd.f32 %v926_v40, %v4147_v25  ;;  %v1070_v9 = vmax.f32 %v924_v55, 0.0  ;;  %v3346_v41 = vld [vmem:[%s4950_s3 + $0x60] ss:$16 sps:$4 sm:$0xff]  }
 0x127   :  { %v1073_v6 = vmax.f32 %v935_v27, 0.0  ;;  %2034 = vmatprep.mubr.bf16.mxu1 %v3338_v47  ;;  %v4341_v32 = vpop.permute.xlu1 %446 }
 0x128   :  { %v1071_v25 = vmax.f32 %v927_v21, 0.0  ;;  %2222 = vmatpush1.bf16.msra.mxu0 %v1211_v10  ;;  %3176 = vmatpush1.bf16.msra.mxu1 %v1211_v10  ;;  %v3344_v10 = vld [vmem:[%s4950_s3 + $0x64] ss:$16 sps:$4 sm:$0xff]   ;;  %v2539_v21 = vld [vmem:[%s4952_s5 + $0x178] sm:$0xff] }
 0x129   :  { %v1213_v20 = vpack.c.bf16 %v1073_v6, %v1072_v3  ;;  %2223 = vmatprep.subr.bf16.mxu0 %v3503_v2  ;;  %3161 = vmatprep.subr.bf16.mxu1 %v3503_v2  ;;  %v4343_v35 = vpop.permute.xlu0 %441 }
 0x12a   :  { %2727 = vperm.xlu1 %3301, %v2529_v17   ;;  %2722 = vperm.xlu0 %3300, %v2528_v56   ;;  %v3137_v0 = vpop.f32.mrb[40].mxu0  ;;  %v1212_v13 = vpack.c.bf16 %v1071_v25, %v1070_v9  ;;  %v2538_v17 = vld [vmem:[%s4952_s5 + $0x170] sm:$0xff] }
 0x12b   :  { %v948_v43 = vadd.f32 %v3137_v0, %v4207_v34  ;;  %v939_v15 = vpop.f32.mrb[41].mxu0  ;;  %2035 = vmatmul.mubr.bf16.gmra.mrb[4].mxu1 %v3340_v24  ;;  %v3341_v34 = vld [vmem:[%s4950_s3 + $0x44] ss:$16 sps:$4 sm:$0xff]   ;;  %v4359_v48 = vpop.permute.xlu1 %456 }
 0x12c   :  { %v3138_v16 = vpop.f32.mrb[42].mxu0  ;;  %v940_v18 = vadd.f32 %v939_v15, %v4185_v12  ;;  %2224 = vmatpush1.bf16.msra.mxu0 %v1212_v13  ;;  %3177 = vmatpush1.bf16.msra.mxu1 %v1212_v13  ;;  %v2532_v12 = vld [vmem:[%s4952_s5 + $0x140] sm:$0xff] }
 0x12d   :  { %v951_v63 = vadd.f32 %v3138_v16, %v4197_v37  ;;  %v942_v22 = vpop.f32.mrb[43].mxu0  ;;  %v1076_v23 = vmax.f32 %v948_v43, 0.0  ;;  %2225 = vmatprep.subr.bf16.mxu0 %v3503_v2  ;;  %3162 = vmatprep.subr.bf16.mxu1 %v3503_v2  ;;  %v3343_v37 = vld [vmem:[%s4950_s3 + $0x40] ss:$16 sps:$4 sm:$0xff]   ;;  %v4370_v58 = vpop.permute.xlu0 %451  ;;  %v3347_v24 = vld [vmem:[%s4950_s3 + $0x84] ss:$16 sps:$4 sm:$0xff]  }
 0x12e   :  { %2737 = vperm.xlu1 %3301, %v2531_v46   ;;  %2732 = vperm.xlu0 %3300, %v2530_v5   ;;  %v943_v29 = vadd.f32 %v942_v22, %v4183_v42  ;;  %v1074_v42 = vmax.f32 %v940_v18, 0.0 }
 0x12f   :  { %v1077_v26 = vmax.f32 %v951_v63, 0.0  ;;  %2042 = vmatprep.mubr.bf16.mxu1 %v3341_v34  ;;  %v3350_v63 = vld [vmem:[%s4950_s3 + $0xa4] ss:$16 sps:$4 sm:$0xff]  }
 0x130   :  { %v1075_v59 = vmax.f32 %v943_v29, 0.0  ;;  %2226 = vmatpush1.bf16.msra.mxu0 %v1213_v20  ;;  %3178 = vmatpush1.bf16.msra.mxu1 %v1213_v20 }
 0x131   :  { %v1215_v33 = vpack.c.bf16 %v1077_v26, %v1076_v23  ;;  %2227 = vmatprep.subr.bf16.mxu0 %v3503_v2  ;;  %3163 = vmatprep.subr.bf16.mxu1 %v3503_v2  ;;  %v4391_v25 = vpop.permute.xlu0 %461 }
 0x132   :  { %2747 = vperm.xlu1 %3301, %v2533_v31   ;;  %2742 = vperm.xlu0 %3300, %v2532_v12   ;;  %v3141_v30 = vpop.f32.mrb[44].mxu0  ;;  %v1214_v36 = vpack.c.bf16 %v1075_v59, %v1074_v42 }
 0x133   :  { %v964_v11 = vadd.f32 %v3141_v30, %v4241_v8  ;;  %v955_v14 = vpop.f32.mrb[45].mxu0  ;;  %2043 = vmatmul.mubr.bf16.gmra.mrb[8].mxu1 %v3343_v37  ;;  %v3352_v37 = vld [vmem:[%s4950_s3 + $0xa0] ss:$16 sps:$4 sm:$0xff]  }
 0x134   :  { %v3142_v39 = vpop.f32.mrb[46].mxu0  ;;  %v956_v8 = vadd.f32 %v955_v14, %v4221_v51  ;;  %2228 = vmatpush1.bf16.msra.mxu0 %v1214_v36  ;;  %3179 = vmatpush1.bf16.msra.mxu1 %v1214_v36  ;;  %v2537_v51 = vld [vmem:[%s4952_s5 + $0x168] sm:$0xff] }
 0x135   :  { %v967_v45 = vadd.f32 %v3142_v39, %v4231_v1  ;;  %v958_v44 = vpop.f32.mrb[47].mxu0  ;;  %v1080_v52 = vmax.f32 %v964_v11, 0.0  ;;  %2229 = vmatprep.subr.bf16.mxu0 %v3503_v2  ;;  %3164 = vmatprep.subr.bf16.mxu1 %v3503_v2  ;;  %v2536_v1 = vld [vmem:[%s4952_s5 + $0x160] sm:$0xff] }
 0x136   :  { %2757 = vperm.xlu1 %3301, %v2535_v50   ;;  %2752 = vperm.xlu0 %3300, %v2534_v38   ;;  %v959_v57 = vadd.f32 %v958_v44, %v4217_v53  ;;  %v1078_v53 = vmax.f32 %v956_v8, 0.0 }
 0x137   :  { %v1081_v54 = vmax.f32 %v967_v45, 0.0  ;;  %2050 = vmatprep.mubr.bf16.mxu1 %v3344_v10  ;;  %v3355_v45 = vld [vmem:[%s4950_s3 + $0xc0] ss:$16 sps:$4 sm:$0xff]  }
 0x138   :  { %v1079_v55 = vmax.f32 %v959_v57, 0.0  ;;  %2230 = vmatpush1.bf16.msra.mxu0 %v1215_v33  ;;  %3180 = vmatpush1.bf16.msra.mxu1 %v1215_v33 }
 0x139   :  { %v1217_v47 = vpack.c.bf16 %v1081_v54, %v1080_v52  ;;  %2231 = vmatprep.subr.bf16.mxu0 %v3503_v2  ;;  %3165 = vmatprep.subr.bf16.mxu1 %v3503_v2 }
 0x13a   :  { %2767 = vperm.xlu1 %3301, %v2537_v51   ;;  %2762 = vperm.xlu0 %3300, %v2536_v1   ;;  %v3145_v27 = vpop.f32.mrb[48].mxu0  ;;  %v1216_v40 = vpack.c.bf16 %v1079_v55, %v1078_v53 }
 0x13b   :  { %v980_v3 = vadd.f32 %v3145_v27, %v4277_v7  ;;  %v971_v6 = vpop.f32.mrb[49].mxu0  ;;  %2051 = vmatmul.mubr.bf16.gmra.mrb[12].mxu1 %v3346_v41  ;;  %v4387_v7 = vpop.permute.xlu1 %466 }
 0x13c   :  { %v3146_v56 = vpop.f32.mrb[50].mxu0  ;;  %v972_v9 = vadd.f32 %v971_v6, %v4255_v49  ;;  %2232 = vmatpush1.bf16.msra.mxu0 %v1216_v40  ;;  %3181 = vmatpush1.bf16.msra.mxu1 %v1216_v40  ;;  %v3349_v49 = vld [vmem:[%s4950_s3 + $0x80] ss:$16 sps:$4 sm:$0xff]  }
 0x13d   :  { %v983_v20 = vadd.f32 %v3146_v56, %v4267_v4  ;;  %v974_v0 = vpop.f32.mrb[51].mxu0  ;;  %v1084_v13 = vmax.f32 %v980_v3, 0.0  ;;  %2233 = vmatprep.subr.bf16.mxu0 %v3503_v2  ;;  %3166 = vmatprep.subr.bf16.mxu1 %v3503_v2  ;;  %v3358_v6 = vld [vmem:[%s4950_s3 + $0xe0] ss:$16 sps:$4 sm:$0xff]  }
 0x13e   :  { %2777 = vperm.xlu1 %3301, %v2539_v21   ;;  %2772 = vperm.xlu0 %3300, %v2538_v17   ;;  %v975_v15 = vadd.f32 %v974_v0, %v4253_v62  ;;  %v1082_v4 = vmax.f32 %v972_v9, 0.0  ;;  %v3359_v9 = vld [vmem:[%s4950_s3 + $0x104] ss:$16 sps:$4 sm:$0xff]   ;;  %v3367_v0 = vld [vmem:[%s4950_s3 + $0x2c] ss:$16 sps:$4 sm:$0xff]  }
 0x13f   :  { %v1085_v43 = vmax.f32 %v983_v20, 0.0  ;;  %2058 = vmatprep.mubr.bf16.mxu1 %v3347_v24  ;;  %v3364_v20 = vld [vmem:[%s4950_s3 + $0x100] ss:$16 sps:$4 sm:$0xff]  }
 0x140   :  { %v1083_v5 = vmax.f32 %v975_v15, 0.0  ;;  %2234 = vmatpush1.bf16.msra.mxu0 %v1217_v47  ;;  %3182 = vmatpush1.bf16.msra.mxu1 %v1217_v47  ;;  %v3373_v15 = vld [vmem:[%s4950_s3 + $0x4c] ss:$16 sps:$4 sm:$0xff]  }
 0x141   :  { %v1219_v46 = vpack.c.bf16 %v1085_v43, %v1084_v13  ;;  %2235 = vmatprep.subr.bf16.mxu0 %v3503_v2  ;;  %3167 = vmatprep.subr.bf16.mxu1 %v3503_v2  ;;  %v3370_v13 = vld [vmem:[%s4950_s3 + $0x28] ss:$16 sps:$4 sm:$0xff]   ;;  %v3371_v43 = vld [vmem:[%s4950_s3 + $0x144] ss:$16 sps:$4 sm:$0xff]  }
 0x142   :  { %v3149_v16 = vpop.f32.mrb[52].mxu0  ;;  %v1218_v62 = vpack.c.bf16 %v1083_v5, %v1082_v4  ;;  %v3376_v4 = vld [vmem:[%s4950_s3 + $0x48] ss:$16 sps:$4 sm:$0xff]   ;;  %v3379_v5 = vld [vmem:[%s4950_s3 + $0x6c] ss:$16 sps:$4 sm:$0xff]  }
 0x143   :  { %v996_v34 = vadd.f32 %v3149_v16, %v4322_v19  ;;  %v987_v18 = vpop.f32.mrb[53].mxu0  ;;  %2059 = vmatmul.mubr.bf16.gmra.mrb[16].mxu1 %v3349_v49  ;;  %v3375_v49 = vld [vmem:[%s4950_s3 + $0x140] ss:$16 sps:$4 sm:$0xff]  }
 0x144   :  { %v3150_v22 = vpop.f32.mrb[54].mxu0  ;;  %v988_v23 = vadd.f32 %v987_v18, %v4297_v61  ;;  %2236 = vmatpush1.bf16.msra.mxu0 %v1218_v62  ;;  %3183 = vmatpush1.bf16.msra.mxu1 %v1218_v62  ;;  %v3381_v16 = vld [vmem:[%s4950_s3 + $0x160] ss:$16 sps:$4 sm:$0xff]   ;;  %v3382_v62 = vld [vmem:[%s4950_s3 + $0x68] ss:$16 sps:$4 sm:$0xff]  }
 0x145   :  { %v999_v26 = vadd.f32 %v3150_v22, %v4311_v28  ;;  %v990_v29 = vpop.f32.mrb[55].mxu0  ;;  %2237 = vmatprep.subr.bf16.mxu0 %v3503_v2  ;;  %3168 = vmatprep.subr.bf16.mxu1 %v3503_v2  ;;  %v1088_v31 = vmax.f32 %v996_v34, 0.0  ;;  %v3383_v34 = vld [vmem:[%s4950_s3 + $0x184] ss:$16 sps:$4 sm:$0xff]   ;;  %v3385_v18 = vld [vmem:[%s4950_s3 + $0x8c] ss:$16 sps:$4 sm:$0xff]  }
 0x146   :  { %v991_v12 = vadd.f32 %v990_v29, %v4293_v60  ;;  %2066 = vmatprep.mubr.bf16.mxu1 %v3350_v63  ;;  %v1086_v42 = vmax.f32 %v988_v23, 0.0  ;;  %v3353_v60 = vld [vmem:[%s4950_s3 + $0xc4] ss:$16 sps:$4 sm:$0xff]   ;;  %v3387_v63 = vld [vmem:[%s4950_s3 + $0x180] ss:$16 sps:$4 sm:$0xff]  }
 0x147   :  { %v1089_v19 = vmax.f32 %v999_v26, 0.0  ;;  %v3388_v22 = vld [vmem:[%s4950_s3 + $0x88] ss:$16 sps:$4 sm:$0xff]   ;;  %v3389_v23 = vld [vmem:[%s4950_s3 + $0x1a4] ss:$16 sps:$4 sm:$0xff]  }
 0x148   :  { %v1087_v33 = vmax.f32 %v991_v12, 0.0  ;;  %2238 = vmatpush1.bf16.msra.mxu0 %v1219_v46  ;;  %3184 = vmatpush1.bf16.msra.mxu1 %v1219_v46  ;;  %v3377_v46 = vld [vmem:[%s4950_s3 + $0x164] ss:$16 sps:$4 sm:$0xff]   ;;  %v3391_v26 = vld [vmem:[%s4950_s3 + $0xac] ss:$16 sps:$4 sm:$0xff]  }
 0x149   :  { %v1221_v61 = vpack.c.bf16 %v1089_v19, %v1088_v31  ;;  %2239 = vmatprep.subr.bf16.mxu0 %v3503_v2  ;;  %3169 = vmatprep.subr.bf16.mxu1 %v3503_v2  ;;  %v3393_v29 = vld [vmem:[%s4950_s3 + $0x1a0] ss:$16 sps:$4 sm:$0xff]   ;;  %v3394_v31 = vld [vmem:[%s4950_s3 + $0xa8] ss:$16 sps:$4 sm:$0xff]   ;;  %v3395_v19 = vld [vmem:[%s4950_s3 + $0x1c4] ss:$16 sps:$4 sm:$0xff]  }
 0x14a   :  { %v3153_v28 = vpop.f32.mrb[56].mxu0  ;;  %v1220_v59 = vpack.c.bf16 %v1087_v33, %v1086_v42  ;;  %v3397_v12 = vld [vmem:[%s4950_s3 + $0xcc] ss:$16 sps:$4 sm:$0xff]   ;;  %v3400_v42 = vld [vmem:[%s4950_s3 + $0xc8] ss:$16 sps:$4 sm:$0xff]  }
 0x14b   :  { %v1012_v30 = vadd.f32 %v3153_v28, %v4370_v58  ;;  %v1003_v36 = vpop.f32.mrb[57].mxu0  ;;  %2067 = vmatmul.mubr.bf16.gmra.mrb[20].mxu1 %v3352_v37  ;;  %v477_v58 = vpop.permute.xlu1 %476  ;;  %v3399_v37 = vld [vmem:[%s4950_s3 + $0x1c0] ss:$16 sps:$4 sm:$0xff]   ;;  %v3403_v33 = vld [vmem:[%s4950_s3 + $0xec] ss:$16 sps:$4 sm:$0xff]  }
 0x14c   :  { %v3154_v11 = vpop.f32.mrb[58].mxu0  ;;  %v1004_v14 = vadd.f32 %v1003_v36, %v4343_v35  ;;  %2240 = vmatpush1.bf16.msra.mxu0 %v1220_v59  ;;  %3185 = vmatpush1.bf16.msra.mxu1 %v1220_v59  ;;  %v3405_v28 = vld [vmem:[%s4950_s3 + $0x1e0] ss:$16 sps:$4 sm:$0xff]   ;;  %v3406_v59 = vld [vmem:[%s4950_s3 + $0xe8] ss:$16 sps:$4 sm:$0xff]  }
 0x14d   :  { %v1015_v50 = vadd.f32 %v3154_v11, %v4359_v48  ;;  %v1006_v38 = vpop.f32.mrb[59].mxu0  ;;  %2241 = vmatprep.subr.bf16.mxu0 %v3503_v2  ;;  %3170 = vmatprep.subr.bf16.mxu1 %v3503_v2  ;;  %v1092_v39 = vmax.f32 %v1012_v30, 0.0  ;;  %v472_v48 = vpop.permute.xlu0 %471  ;;  %v3407_v30 = vld [vmem:[%s4950_s3 + $0x204] ss:$16 sps:$4 sm:$0xff]   ;;  %v3409_v36 = vld [vmem:[%s4950_s3 + $0x10c] ss:$16 sps:$4 sm:$0xff]  }
 0x14e   :  { %v1007_v8 = vadd.f32 %v1006_v38, %v4341_v32  ;;  %2074 = vmatprep.mubr.bf16.mxu1 %v3353_v60  ;;  %v1090_v44 = vmax.f32 %v1004_v14, 0.0  ;;  %v3356_v32 = vld [vmem:[%s4950_s3 + $0xe4] ss:$16 sps:$4 sm:$0xff]   ;;  %v3411_v60 = vld [vmem:[%s4950_s3 + $0x200] ss:$16 sps:$4 sm:$0xff]  }
 0x14f   :  { %v1093_v10 = vmax.f32 %v1015_v50, 0.0  ;;  %v3412_v11 = vld [vmem:[%s4950_s3 + $0x108] ss:$16 sps:$4 sm:$0xff]   ;;  %v3413_v14 = vld [vmem:[%s4950_s3 + $0x224] ss:$16 sps:$4 sm:$0xff]  }
 0x150   :  { %v1091_v52 = vmax.f32 %v1007_v8, 0.0  ;;  %2242 = vmatpush1.bf16.msra.mxu0 %v1221_v61  ;;  %3186 = vmatpush1.bf16.msra.mxu1 %v1221_v61  ;;  %v3401_v61 = vld [vmem:[%s4950_s3 + $0x1e4] ss:$16 sps:$4 sm:$0xff]   ;;  %v3415_v50 = vld [vmem:[%s4950_s3 + $0x12c] ss:$16 sps:$4 sm:$0xff]  }
 0x151   :  { %v1223_v35 = vpack.c.bf16 %v1093_v10, %v1092_v39  ;;  %2243 = vmatprep.subr.bf16.mxu0 %v3503_v2  ;;  %3171 = vmatprep.subr.bf16.mxu1 %v3503_v2  ;;  %v3417_v38 = vld [vmem:[%s4950_s3 + $0x220] ss:$16 sps:$4 sm:$0xff]   ;;  %v3418_v39 = vld [vmem:[%s4950_s3 + $0x128] ss:$16 sps:$4 sm:$0xff]   ;;  %v3419_v10 = vld [vmem:[%s4950_s3 + $0x244] ss:$16 sps:$4 sm:$0xff]  }
 0x152   :  { %v3157_v54 = vpop.f32.mrb[60].mxu0  ;;  %v1222_v57 = vpack.c.bf16 %v1091_v52, %v1090_v44  ;;  %v3421_v8 = vld [vmem:[%s4950_s3 + $0x14c] ss:$16 sps:$4 sm:$0xff]   ;;  %v4568_v44 = vpop.permute.xlu0 %1276  ;;  %v3424_v52 = vld [vmem:[%s4950_s3 + $0x148] ss:$16 sps:$4 sm:$0xff]  }
 0x153   :  { %v1028_v51 = vadd.f32 %v3157_v54, %v472_v48  ;;  %v1019_v1 = vpop.f32.mrb[61].mxu0  ;;  %2075 = vmatmul.mubr.bf16.gmra.mrb[24].mxu1 %v3355_v45  ;;  %v4566_v45 = vpop.permute.xlu1 %1281  ;;  %v3425_v54 = vld [vmem:[%s4950_s3 + $0x264] ss:$16 sps:$4 sm:$0xff]  }
 0x154   :  { %v3158_v41 = vpop.f32.mrb[62].mxu0  ;;  %v1020_v53 = vadd.f32 %v1019_v1, %v4391_v25  ;;  %2244 = vmatpush1.bf16.msra.mxu0 %v1222_v57  ;;  %3187 = vmatpush1.bf16.msra.mxu1 %v1222_v57  ;;  %v3365_v25 = vld [vmem:[%s4950_s3 + $0x124] ss:$16 sps:$4 sm:$0xff]   ;;  %v3427_v57 = vld [vmem:[%s4950_s3 + $0x16c] ss:$16 sps:$4 sm:$0xff]  }
 0x155   :  { %v1031_v47 = vadd.f32 %v3158_v41, %v477_v58  ;;  %v1022_v55 = vpop.f32.mrb[63].mxu0  ;;  %2245 = vmatprep.subr.bf16.mxu0 %v3503_v2  ;;  %3172 = vmatprep.subr.bf16.mxu1 %v3503_v2  ;;  %v1096_v27 = vmax.f32 %v1028_v51, 0.0  ;;  %v3429_v58 = vld [vmem:[%s4950_s3 + $0x260] ss:$16 sps:$4 sm:$0xff]   ;;  %v3430_v41 = vld [vmem:[%s4950_s3 + $0x168] ss:$16 sps:$4 sm:$0xff]  }
 0x156   :  { %v1023_v3 = vadd.f32 %v1022_v55, %v4387_v7  ;;  %2082 = vmatprep.mubr.bf16.mxu1 %v3356_v32  ;;  %v1094_v21 = vmax.f32 %v1020_v53, 0.0  ;;  %v3361_v7 = vld [vmem:[%s4950_s3 + $0x8] ss:$16 sps:$4 sm:$0xff]   ;;  %v4584_v51 = vpop.permute.xlu0 %1286  ;;  %v3431_v53 = vld [vmem:[%s4950_s3 + $0x284] ss:$16 sps:$4 sm:$0xff]  }
 0x157   :  { %v1097_v40 = vmax.f32 %v1031_v47, 0.0  ;;  %v4576_v48 = vpop.permute.xlu1 %1291  ;;  %v3433_v47 = vld [vmem:[%s4950_s3 + $0x18c] ss:$16 sps:$4 sm:$0xff]  }
 0x158   :  { %v1095_v56 = vmax.f32 %v1023_v3, 0.0  ;;  %2246 = vmatpush1.bf16.msra.mxu0 %v1223_v35  ;;  %3188 = vmatpush1.bf16.msra.mxu1 %v1223_v35  ;;  %v3423_v35 = vld [vmem:[%s4950_s3 + $0x240] ss:$16 sps:$4 sm:$0xff]   ;;  %v3436_v3 = vld [vmem:[%s4950_s3 + $0x188] ss:$16 sps:$4 sm:$0xff]  }
 0x159   :  { %v1225_v17 = vpack.c.bf16 %v1097_v40, %v1096_v27  ;;  %2247 = vmatprep.subr.bf16.mxu0 %v3503_v2  ;;  %3173 = vmatprep.subr.bf16.mxu1 %v3503_v2  ;;  %v3435_v40 = vld [vmem:[%s4950_s3 + $0x280] ss:$16 sps:$4 sm:$0xff]  }
 0x15a   :  { %v1224_v24 = vpack.c.bf16 %v1095_v56, %v1094_v21  ;;  %v4588_v32 = vpop.permute.xlu0 %1296  ;;  %v3439_v21 = vld [vmem:[%s4950_s3 + $0x1ac] ss:$16 sps:$4 sm:$0xff]  }
 0x15b   :  { %2083 = vmatmul.mubr.bf16.gmra.mrb[28].mxu1 %v3358_v6  ;;  %v4586_v1 = vpop.permute.xlu1 %1301  ;;  %v3437_v6 = vld [vmem:[%s4950_s3 + $0x2a4] ss:$16 sps:$4 sm:$0xff]  }
 0x15c   :  { %2248 = vmatpush1.bf16.msra.mxu0 %v1224_v24  ;;  %3189 = vmatpush1.bf16.msra.mxu1 %v1224_v24  ;;  %v3441_v24 = vld [vmem:[%s4950_s3 + $0x2a0] ss:$16 sps:$4 sm:$0xff]  }
 0x15d   :  { %2249 = vmatprep.subr.bf16.mxu0 %v3503_v2  ;;  %3174 = vmatprep.subr.bf16.mxu1 %v3503_v2  ;;  %v3369_v2 = vld [vmem:[%s4950_s3 + $0x120] ss:$16 sps:$4 sm:$0xff]  }
 0x15e   :  { %2090 = vmatprep.mubr.bf16.mxu1 %v3359_v9  ;;  %v4604_v27 = vpop.permute.xlu0 %1306  ;;  %v3442_v9 = vld [vmem:[%s4950_s3 + $0x1a8] ss:$16 sps:$4 sm:$0xff]  }
 0x15f   :  { %v4602_v55 = vpop.permute.xlu1 %1311 }
 0x160   :  { %2250 = vmatpush1.bf16.msra.mxu0 %v1225_v17  ;;  %3190 = vmatpush1.bf16.msra.mxu1 %v1225_v17 }
 0x162   :  { %v4620_v56 = vpop.permute.xlu0 %1316 }
 0x163   :  { %2091 = vmatmul.mubr.bf16.gmra.mrb[32].mxu1 %v3364_v20  ;;  %2252 = vmatmul.mubr.bf16.vlgmr.msra.gmra.mrb[64].mxu0 %v3361_v7  ;;  %v4618_v17 = vpop.permute.xlu1 %1321  ;;  %v3443_v20 = vld [vmem:[%s4950_s3 + $0x2c4] ss:$16 sps:$4 sm:$0xff]  }
 0x164   :  { %2098 = vmatprep.mubr.bf16.mxu1 %v3365_v25  ;;  %2259 = vmatprep.mubr.bf16.mxu0 %v3367_v0  ;;  %v3445_v25 = vld [vmem:[%s4950_s3 + $0x1cc] ss:$16 sps:$4 sm:$0xff]  }
 0x166   :  { %v4636_v0 = vpop.permute.xlu0 %1326 }
 0x167   :  { %v4628_v7 = vpop.permute.xlu1 %1331 }
 0x16b   :  { %2099 = vmatmul.mubr.bf16.gmra.mrb[36].mxu1 %v3369_v2  ;;  %2260 = vmatmul.mubr.bf16.gmra.mrb[68].mxu0 %v3370_v13  ;;  %v4638_v2 = vpop.permute.xlu1 %1341  ;;  %v4640_v13 = vpop.permute.xlu0 %1336 }
 0x16c   :  { %2106 = vmatprep.mubr.bf16.mxu1 %v3371_v43  ;;  %2267 = vmatprep.mubr.bf16.mxu0 %v3373_v15  ;;  %v3447_v43 = vld [vmem:[%s4950_s3 + $0x2c0] ss:$16 sps:$4 sm:$0xff]   ;;  %v3448_v15 = vld [vmem:[%s4950_s3 + $0x1c8] ss:$16 sps:$4 sm:$0xff]  }
 0x173   :  { %2107 = vmatmul.mubr.bf16.gmra.mrb[40].mxu1 %v3375_v49  ;;  %2268 = vmatmul.mubr.bf16.gmra.mrb[72].mxu0 %v3376_v4  ;;  %v3449_v49 = vld [vmem:[%s4950_s3 + $0x2e4] ss:$16 sps:$4 sm:$0xff]   ;;  %v3451_v4 = vld [vmem:[%s4950_s3 + $0x1ec] ss:$16 sps:$4 sm:$0xff]  }
 0x174   :  { %2114 = vmatprep.mubr.bf16.mxu1 %v3377_v46  ;;  %2275 = vmatprep.mubr.bf16.mxu0 %v3379_v5  ;;  %v4654_v46 = vpop.permute.xlu1 %1351  ;;  %v4656_v5 = vpop.permute.xlu0 %1346 }
 0x17b   :  { %2115 = vmatmul.mubr.bf16.gmra.mrb[44].mxu1 %v3381_v16  ;;  %2276 = vmatmul.mubr.bf16.gmra.mrb[76].mxu0 %v3382_v62  ;;  %v3453_v16 = vld [vmem:[%s4950_s3 + $0x2e0] ss:$16 sps:$4 sm:$0xff]   ;;  %v3454_v62 = vld [vmem:[%s4950_s3 + $0x1e8] ss:$16 sps:$4 sm:$0xff]  }
 0x17c   :  { %2122 = vmatprep.mubr.bf16.mxu1 %v3383_v34  ;;  %2283 = vmatprep.mubr.bf16.mxu0 %v3385_v18  ;;  %v3455_v34 = vld [vmem:[%s4950_s3 + $0x20c] ss:$16 sps:$4 sm:$0xff]  }
 0x17d   :  { %v3459_v18 = vld [vmem:[%s4950_s3 + $0x26c] ss:$16 sps:$4 sm:$0xff]  }
 0x183   :  { %2123 = vmatmul.mubr.bf16.gmra.mrb[48].mxu1 %v3387_v63  ;;  %2284 = vmatmul.mubr.bf16.gmra.mrb[80].mxu0 %v3388_v22  ;;  %v4670_v63 = vpop.permute.xlu1 %1361  ;;  %v4672_v22 = vpop.permute.xlu0 %1356 }
 0x184   :  { %2130 = vmatprep.mubr.bf16.mxu1 %v3389_v23  ;;  %2291 = vmatprep.mubr.bf16.mxu0 %v3391_v26  ;;  %v3457_v23 = vld [vmem:[%s4950_s3 + $0x268] ss:$16 sps:$4 sm:$0xff]  }
 0x185   :  { %v3460_v26 = vld [vmem:[%s4950_s3 + $0x208] ss:$16 sps:$4 sm:$0xff]  }
 0x18b   :  { %2131 = vmatmul.mubr.bf16.gmra.mrb[52].mxu1 %v3393_v29  ;;  %2292 = vmatmul.mubr.bf16.gmra.mrb[84].mxu0 %v3394_v31  ;;  %v4680_v29 = vpop.permute.xlu1 %1371  ;;  %v3461_v31 = vld [vmem:[%s4950_s3 + $0x22c] ss:$16 sps:$4 sm:$0xff]  }
 0x18c   :  { %2138 = vmatprep.mubr.bf16.mxu1 %v3395_v19  ;;  %2299 = vmatprep.mubr.bf16.mxu0 %v3397_v12  ;;  %v3463_v19 = vld [vmem:[%s4950_s3 + $0x28c] ss:$16 sps:$4 sm:$0xff]   ;;  %v4688_v12 = vpop.permute.xlu0 %1366 }
 0x193   :  { %2139 = vmatmul.mubr.bf16.gmra.mrb[56].mxu1 %v3399_v37  ;;  %2300 = vmatmul.mubr.bf16.gmra.mrb[88].mxu0 %v3400_v42  ;;  %v4690_v37 = vpop.permute.xlu1 %1381  ;;  %v4692_v42 = vpop.permute.xlu0 %1376 }
 0x194   :  { %2146 = vmatprep.mubr.bf16.mxu1 %v3401_v61  ;;  %2307 = vmatprep.mubr.bf16.mxu0 %v3403_v33  ;;  %v3465_v61 = vld [vmem:[%s4950_s3 + $0x228] ss:$16 sps:$4 sm:$0xff]  }
 0x195   :  { %v3466_v33 = vld [vmem:[%s4950_s3 + $0x288] ss:$16 sps:$4 sm:$0xff]  }
 0x19b   :  { %2147 = vmatmul.mubr.bf16.gmra.mrb[60].mxu1 %v3405_v28  ;;  %2308 = vmatmul.mubr.bf16.gmra.mrb[92].mxu0 %v3406_v59  ;;  %v3467_v28 = vld [vmem:[%s4950_s3 + $0x24c] ss:$16 sps:$4 sm:$0xff]  }
 0x19c   :  { %2154 = vmatprep.mubr.bf16.mxu1 %v3407_v30  ;;  %2315 = vmatprep.mubr.bf16.mxu0 %v3409_v36  ;;  %v3469_v59 = vld [vmem:[%s4950_s3 + $0x2ac] ss:$16 sps:$4 sm:$0xff]   ;;  %v4706_v30 = vpop.permute.xlu1 %1391  ;;  %v4708_v36 = vpop.permute.xlu0 %1386 }
 0x1a3   :  { %2155 = vmatmul.mubr.bf16.gmra.mrb[64].mxu1 %v3411_v60  ;;  %2316 = vmatmul.mubr.bf16.gmra.mrb[96].mxu0 %v3412_v11  ;;  %v3471_v60 = vld [vmem:[%s4950_s3 + $0x248] ss:$16 sps:$4 sm:$0xff]  }
 0x1a4   :  { %2162 = vmatprep.mubr.bf16.mxu1 %v3413_v14  ;;  %2323 = vmatprep.mubr.bf16.mxu0 %v3415_v50  ;;  %v3472_v11 = vld [vmem:[%s4950_s3 + $0x2a8] ss:$16 sps:$4 sm:$0xff]   ;;  %v3473_v14 = vld [vmem:[%s4950_s3 + $0x2cc] ss:$16 sps:$4 sm:$0xff]   ;;  %v4719_v50 = vpop.permute.xlu1 %1401 }
 0x1ab   :  { %2163 = vmatmul.mubr.bf16.gmra.mrb[68].mxu1 %v3417_v38  ;;  %2324 = vmatmul.mubr.bf16.gmra.mrb[100].mxu0 %v3418_v39  ;;  %v4721_v38 = vpop.permute.xlu0 %1396 }
 0x1ac   :  { %2170 = vmatprep.mubr.bf16.mxu1 %v3419_v10  ;;  %2331 = vmatprep.mubr.bf16.mxu0 %v3421_v8  ;;  %v3475_v8 = vld [vmem:[%s4950_s3 + $0x2c8] ss:$16 sps:$4 sm:$0xff]  }
 0x1b3   :  { %2171 = vmatmul.mubr.bf16.gmra.mrb[72].mxu1 %v3423_v35  ;;  %2332 = vmatmul.mubr.bf16.gmra.mrb[104].mxu0 %v3424_v52  ;;  %v4726_v35 = vpop.permute.xlu1 %1411 }
 0x1b4   :  { %2178 = vmatprep.mubr.bf16.mxu1 %v3425_v54  ;;  %2339 = vmatprep.mubr.bf16.mxu0 %v3427_v57  ;;  %v3476_v54 = vld [vmem:[%s4950_s3 + $0x2ec] ss:$16 sps:$4 sm:$0xff]   ;;  %v4731_v57 = vpop.permute.xlu0 %1406 }
 0x1bb   :  { %2179 = vmatmul.mubr.bf16.gmra.mrb[76].mxu1 %v3429_v58  ;;  %2340 = vmatmul.mubr.bf16.gmra.mrb[108].mxu0 %v3430_v41  ;;  %v4733_v41 = vpop.permute.xlu1 %1421 }
 0x1bc   :  { %2186 = vmatprep.mubr.bf16.mxu1 %v3431_v53  ;;  %2347 = vmatprep.mubr.bf16.mxu0 %v3433_v47  ;;  %v4737_v47 = vpop.permute.xlu0 %1416 }
 0x1c3   :  { %2187 = vmatmul.mubr.bf16.gmra.mrb[80].mxu1 %v3435_v40  ;;  %2348 = vmatmul.mubr.bf16.gmra.mrb[112].mxu0 %v3436_v3  ;;  %v3478_v3 = vld [vmem:[%s4950_s3 + $0x2e8] ss:$16 sps:$4 sm:$0xff]  }
 0x1c4   :  { %2194 = vmatprep.mubr.bf16.mxu1 %v3437_v6  ;;  %2355 = vmatprep.mubr.bf16.mxu0 %v3439_v21 }
 0x1cb   :  { %2195 = vmatmul.mubr.bf16.gmra.mrb[84].mxu1 %v3441_v24  ;;  %2356 = vmatmul.mubr.bf16.gmra.mrb[116].mxu0 %v3442_v9  ;;  %v4744_v24 = vpop.permute.xlu1 %1431  ;;  %v4746_v9 = vpop.permute.xlu0 %1426 }
 0x1cc   :  { %2202 = vmatprep.mubr.bf16.mxu1 %v3443_v20  ;;  %2363 = vmatprep.mubr.bf16.mxu0 %v3445_v25  ;;  %4955 = vst [vmem:[#allocation6_spill] sm:$0xff] %v4744_v24  ;;  %4956 = vst [vmem:[#allocation7_spill] sm:$0xff] %v4746_v9 }
 0x1d3   :  { %2203 = vmatmul.mubr.bf16.gmra.mrb[88].mxu1 %v3447_v43  ;;  %2364 = vmatmul.mubr.bf16.gmra.mrb[120].mxu0 %v3448_v15 }
 0x1d4   :  { %2210 = vmatprep.mubr.bf16.mxu1 %v3449_v49  ;;  %2371 = vmatprep.mubr.bf16.mxu0 %v3451_v4  ;;  %v4752_v49 = vpop.permute.xlu1 %1441  ;;  %v4754_v4 = vpop.permute.xlu0 %1436 }
 0x1d5   :  { %4957 = vst [vmem:[#allocation8_spill] sm:$0xff] %v4752_v49  ;;  %4958 = vst [vmem:[#allocation9_spill] sm:$0xff] %v4754_v4 }
 0x1db   :  { %2211 = vmatmul.mubr.bf16.gmra.mrb[92].mxu1 %v3453_v16  ;;  %2372 = vmatmul.mubr.bf16.gmra.mrb[124].mxu0 %v3454_v62 }
 0x1dc   :  { %2379 = vmatprep.mubr.bf16.mxu0 %v3455_v34  ;;  %2403 = vmatprep.mubr.bf16.mxu1 %v3459_v18  ;;  %v4758_v34 = vpop.permute.xlu1 %1451 }
 0x1dd   :  { %4959 = vst [vmem:[#allocation10_spill] sm:$0xff] %v4758_v34 }
 0x1e3   :  { %2380 = vmatmul.mubr.bf16.gmra.mrb[128].mxu0 %v3460_v26  ;;  %2404 = vmatmul.mubr.bf16.vlgmr.msra.gmra.mrb[76].mxu1 %v3457_v23  ;;  %v4762_v23 = vpop.permute.xlu0 %1446 }
 0x1e4   :  { %2387 = vmatprep.mubr.bf16.mxu0 %v3461_v31  ;;  %2411 = vmatprep.mubr.bf16.mxu1 %v3463_v19  ;;  %4960 = vst [vmem:[#allocation11_spill] sm:$0xff] %v4762_v23  ;;  %v4764_v31 = vpop.permute.xlu1 %1461 }
 0x1e5   :  { %4961 = vst [vmem:[#allocation12_spill] sm:$0xff] %v4764_v31 }
 0x1eb   :  { %2388 = vmatmul.mubr.bf16.gmra.mrb[132].mxu0 %v3465_v61  ;;  %2412 = vmatmul.mubr.bf16.gmra.mrb[80].mxu1 %v3466_v33  ;;  %v4768_v61 = vpop.permute.xlu0 %1456 }
 0x1ec   :  { %2395 = vmatprep.mubr.bf16.mxu0 %v3467_v28  ;;  %2419 = vmatprep.mubr.bf16.mxu1 %v3469_v59  ;;  %4962 = vst [vmem:[#allocation13_spill] sm:$0xff] %v4768_v61 }
 0x1f3   :  { %2396 = vmatmul.mubr.bf16.gmra.mrb[136].mxu0 %v3471_v60  ;;  %2420 = vmatmul.mubr.bf16.gmra.mrb[84].mxu1 %v3472_v11  ;;  %v4772_v60 = vpop.permute.xlu1 %1471  ;;  %v4774_v11 = vpop.permute.xlu0 %1466 }
 0x1f4   :  { %2427 = vmatprep.mubr.bf16.mxu1 %v3473_v14  ;;  %4963 = vst [vmem:[#allocation14_spill] sm:$0xff] %v4772_v60  ;;  %4964 = vst [vmem:[#allocation15_spill] sm:$0xff] %v4774_v11 }
 0x1f6   :  { %v2028_v39 = vpop.f32.mrb[0].mxu1 }
 0x1f7   :  { %v2030_v10 = vpop.f32.mrb[1].mxu1 }
 0x1f8   :  { %v2031_v52 = vpop.f32.mrb[2].mxu1 }
 0x1f9   :  { %v2033_v58 = vpop.f32.mrb[3].mxu1 }
 0x1fa   :  { %v4780_v58 = vpop.permute.xlu1 %1481 }
 0x1fb   :  { %2428 = vmatmul.mubr.bf16.gmra.mrb[88].mxu1 %v3475_v8  ;;  %4965 = vst [vmem:[#allocation16_spill] sm:$0xff] %v4780_v58 }
 0x1fc   :  { %2435 = vmatprep.mubr.bf16.mxu1 %v3476_v54 }
 0x1fe   :  { %v4735_v53 = vpop.f32.mrb[4].mxu1 }
 0x1ff   :  { %v2038_v40 = vpop.f32.mrb[5].mxu1 }
 0x200   :  { %v4742_v6 = vpop.f32.mrb[6].mxu1  ;;  %v4782_v40 = vpop.permute.xlu0 %1476 }
 0x201   :  { %v2041_v21 = vpop.f32.mrb[7].mxu1  ;;  %4966 = vst [vmem:[#allocation17_spill] sm:$0xff] %v4782_v40 }
 0x203   :  { %2436 = vmatmul.mubr.bf16.gmra.mrb[92].mxu1 %v3478_v3 }
 0x206   :  { %v4748_v20 = vpop.f32.mrb[8].mxu1 }
 0x207   :  { %v2046_v25 = vpop.f32.mrb[9].mxu1 }
 0x208   :  { %v4750_v43 = vpop.f32.mrb[10].mxu1  ;;  %v4786_v25 = vpop.permute.xlu1 %1491 }
 0x209   :  { %v2049_v15 = vpop.f32.mrb[11].mxu1  ;;  %4967 = vst [vmem:[#allocation18_spill] sm:$0xff] %v4786_v25  ;;  %v2029_v25 = vadd.f32 %v2028_v39, %v4568_v44  ;;  %v2037_v44 = vadd.f32 %v4735_v53, %v4584_v51 }
 0x20e   :  { %v4756_v16 = vpop.f32.mrb[12].mxu1 }
 0x20f   :  { %v2054_v62 = vpop.f32.mrb[13].mxu1 }
 0x210   :  { %v4760_v18 = vpop.f32.mrb[14].mxu1  ;;  %v4790_v62 = vpop.permute.xlu0 %1486 }
 0x211   :  { %v2057_v26 = vpop.f32.mrb[15].mxu1  ;;  %4968 = vst [vmem:[#allocation19_spill] sm:$0xff] %v4790_v62 }
 0x216   :  { %v4766_v19 = vpop.f32.mrb[16].mxu1 }
 0x217   :  { %v2062_v33 = vpop.f32.mrb[17].mxu1 }
 0x218   :  { %v4770_v28 = vpop.f32.mrb[18].mxu1  ;;  %v4792_v33 = vpop.permute.xlu1 %1501 }
 0x219   :  { %v2065_v59 = vpop.f32.mrb[19].mxu1  ;;  %4969 = vst [vmem:[#allocation20_spill] sm:$0xff] %v4792_v33 }
 0x21c   :  { %v4800_v60 = vpop.permute.xlu1 %1511 }
 0x21d   :  { %4971 = vst [vmem:[#allocation22_spill] sm:$0xff] %v4800_v60 }
 0x21e   :  { %v4776_v14 = vpop.f32.mrb[20].mxu1 }
 0x21f   :  { %v2070_v10 = vpop.f32.mrb[21].mxu1 }
 0x220   :  { %v4778_v8 = vpop.f32.mrb[22].mxu1  ;;  %v4796_v10 = vpop.permute.xlu0 %1496 }
 0x221   :  { %v2073_v54 = vpop.f32.mrb[23].mxu1  ;;  %4970 = vst [vmem:[#allocation21_spill] sm:$0xff] %v4796_v10  ;;  %v2548_v4 = vpop.permute.xlu1 %2547 }
 0x226   :  { %v4784_v3 = vpop.f32.mrb[24].mxu1 }
 0x227   :  { %v2078_v21 = vpop.f32.mrb[25].mxu1 }
 0x228   :  { %v4788_v15 = vpop.f32.mrb[26].mxu1  ;;  %v4802_v21 = vpop.permute.xlu0 %1506 }
 0x229   :  { %v2081_v26 = vpop.f32.mrb[27].mxu1  ;;  %4972 = vst [vmem:[#allocation23_spill] sm:$0xff] %v4802_v21 }
 0x22a   :  { %v2032_v26 = vadd.f32 %v2031_v52, %v4566_v45  ;;  %v2040_v52 = vadd.f32 %v4742_v6, %v4576_v48 }
 0x22c   :  { %v2543_v21 = vpop.permute.xlu0 %2542 }
 0x22e   :  { %v4794_v59 = vpop.f32.mrb[28].mxu1 }
 0x22f   :  { %v2086_v54 = vpop.f32.mrb[29].mxu1 }
 0x230   :  { %v4798_v58 = vpop.f32.mrb[30].mxu1  ;;  %v2553_v51 = vpop.permute.xlu0 %2552 }
 0x231   :  { %v2089_v40 = vpop.f32.mrb[31].mxu1 }
 0x236   :  { %v4805_v11 = vpop.f32.mrb[32].mxu1  ;;  %v2253_v62 = vpop.f32.mrb[64].mxu0 }
 0x237   :  { %v2254_v33 = vadd.f32 %v2253_v62, %v2029_v25  ;;  %v2094_v31 = vpop.f32.mrb[33].mxu1  ;;  %v2255_v61 = vpop.f32.mrb[65].mxu0 }
 0x238   :  { %v4808_v34 = vpop.f32.mrb[34].mxu1  ;;  %v2256_v54 = vpop.f32.mrb[66].mxu0 }
 0x239   :  { %v2444_v10 = vmax.f32 %v2254_v33, 0.0  ;;  %v2257_v23 = vadd.f32 %v2256_v54, %v2032_v26  ;;  %v2097_v40 = vpop.f32.mrb[35].mxu1  ;;  %v2258_v49 = vpop.f32.mrb[67].mxu0 }
 0x23b   :  { %v2445_v60 = vmax.f32 %v2257_v23, 0.0  ;;  %v2780_v39 = vmul.f32 %v2543_v21, %v2444_v10  ;;  %v2045_v10 = vadd.f32 %v4748_v20, %v4588_v32  ;;  %v2563_v32 = vpop.permute.xlu0 %2562 }
 0x23d   :  { %v2781_v24 = vmul.f32 %v2548_v4, %v2445_v60  ;;  %v2558_v60 = vpop.permute.xlu1 %2557 }
 0x23e   :  { %v4812_v9 = vpop.f32.mrb[36].mxu1  ;;  %v2261_v45 = vpop.f32.mrb[68].mxu0 }
 0x23f   :  { %v2828_v31 = vadd.f32 %v2781_v24, %v2780_v39  ;;  %v2262_v61 = vadd.f32 %v2261_v45, %v2037_v44  ;;  %v2102_v25 = vpop.f32.mrb[37].mxu1  ;;  %v2263_v62 = vpop.f32.mrb[69].mxu0  ;;  %v2048_v44 = vadd.f32 %v4750_v43, %v4586_v1 }
 0x240   :  { %v4816_v33 = vpop.f32.mrb[38].mxu1  ;;  %v2264_v49 = vpop.f32.mrb[70].mxu0 }
 0x241   :  { %v2446_v23 = vmax.f32 %v2262_v61, 0.0  ;;  %v2265_v26 = vadd.f32 %v2264_v49, %v2040_v52  ;;  %v2105_v54 = vpop.f32.mrb[39].mxu1  ;;  %v2266_v40 = vpop.f32.mrb[71].mxu0 }
 0x242   :  { %v2568_v40 = vpop.permute.xlu1 %2567 }
 0x243   :  { %v2782_v53 = vmul.f32 %v2553_v51, %v2446_v23  ;;  %v2447_v4 = vmax.f32 %v2265_v26, 0.0  ;;  %v2053_v51 = vadd.f32 %v4756_v16, %v4604_v27  ;;  %v2573_v27 = vpop.permute.xlu0 %2572 }
 0x245   :  { %v2829_v21 = vadd.f32 %v2828_v31, %v2782_v53  ;;  %v2783_v48 = vmul.f32 %v2558_v60, %v2447_v4  ;;  %v2056_v60 = vadd.f32 %v4760_v18, %v4602_v55 }
 0x246   :  { %v4820_v6 = vpop.f32.mrb[40].mxu1  ;;  %v2269_v24 = vpop.f32.mrb[72].mxu0 }
 0x247   :  { %v2830_v39 = vadd.f32 %v2829_v21, %v2783_v48  ;;  %v2270_v45 = vadd.f32 %v2269_v24, %v2045_v10  ;;  %v2110_v52 = vpop.f32.mrb[41].mxu1  ;;  %v2271_v61 = vpop.f32.mrb[73].mxu0 }
 0x248   :  { %v4824_v25 = vpop.f32.mrb[42].mxu1  ;;  %v2272_v62 = vpop.f32.mrb[74].mxu0 }
 0x249   :  { %v2448_v49 = vmax.f32 %v2270_v45, 0.0  ;;  %v2273_v23 = vadd.f32 %v2272_v62, %v2048_v44  ;;  %v2113_v26 = vpop.f32.mrb[43].mxu1  ;;  %v2274_v54 = vpop.f32.mrb[75].mxu0 }
 0x24a   :  { %v2061_v26 = vadd.f32 %v4766_v19, %v4620_v56  ;;  %v2583_v56 = vpop.permute.xlu0 %2582 }
 0x24b   :  { %v2784_v20 = vmul.f32 %v2563_v32, %v2448_v49  ;;  %v2449_v31 = vmax.f32 %v2273_v23, 0.0  ;;  %v2578_v23 = vpop.permute.xlu1 %2577 }
 0x24d   :  { %v2831_v53 = vadd.f32 %v2830_v39, %v2784_v20  ;;  %v2785_v1 = vmul.f32 %v2568_v40, %v2449_v31  ;;  %v2064_v20 = vadd.f32 %v4770_v28, %v4618_v17 }
 0x24e   :  { %v4828_v43 = vpop.f32.mrb[44].mxu1  ;;  %v2277_v4 = vpop.f32.mrb[76].mxu0 }
 0x24f   :  { %v2832_v10 = vadd.f32 %v2831_v53, %v2785_v1  ;;  %v2278_v21 = vadd.f32 %v2277_v4, %v2053_v51  ;;  %v2118_v48 = vpop.f32.mrb[45].mxu1  ;;  %v2279_v24 = vpop.f32.mrb[77].mxu0 }
 0x250   :  { %v4832_v44 = vpop.f32.mrb[46].mxu1  ;;  %v2280_v45 = vpop.f32.mrb[78].mxu0 }
 0x251   :  { %v2450_v52 = vmax.f32 %v2278_v21, 0.0  ;;  %v2281_v61 = vadd.f32 %v2280_v45, %v2056_v60  ;;  %v2121_v62 = vpop.f32.mrb[47].mxu1  ;;  %v2282_v49 = vpop.f32.mrb[79].mxu0 }
 0x252   :  { %v2588_v45 = vpop.permute.xlu1 %2587  ;;  %v2072_v49 = vadd.f32 %v4778_v8, %v4628_v7 }
 0x253   :  { %v2786_v16 = vmul.f32 %v2573_v27, %v2450_v52  ;;  %v2451_v39 = vmax.f32 %v2281_v61, 0.0  ;;  %v2069_v52 = vadd.f32 %v4776_v14, %v4636_v0  ;;  %v2593_v0 = vpop.permute.xlu0 %2592 }
 0x255   :  { %v2833_v54 = vadd.f32 %v2832_v10, %v2786_v16  ;;  %v2787_v55 = vmul.f32 %v2578_v23, %v2451_v39 }
 0x256   :  { %v4836_v18 = vpop.f32.mrb[48].mxu1  ;;  %v2285_v32 = vpop.f32.mrb[80].mxu0 }
 0x257   :  { %v2834_v31 = vadd.f32 %v2833_v54, %v2787_v55  ;;  %v2286_v40 = vadd.f32 %v2285_v32, %v2061_v26  ;;  %v2126_v51 = vpop.f32.mrb[49].mxu1  ;;  %v2287_v53 = vpop.f32.mrb[81].mxu0 }
 0x258   :  { %v4840_v1 = vpop.f32.mrb[50].mxu1  ;;  %v2288_v4 = vpop.f32.mrb[82].mxu0  ;;  %v2077_v53 = vadd.f32 %v4784_v3, %v4640_v13 }
 0x259   :  { %v2452_v60 = vmax.f32 %v2286_v40, 0.0  ;;  %v2289_v21 = vadd.f32 %v2288_v4, %v2064_v20  ;;  %v2129_v48 = vpop.f32.mrb[51].mxu1  ;;  %v2290_v24 = vpop.f32.mrb[83].mxu0 }
 0x25a   :  { %v2598_v51 = vpop.permute.xlu1 %2597  ;;  %v2603_v13 = vpop.permute.xlu0 %2602 }
 0x25b   :  { %v2788_v19 = vmul.f32 %v2583_v56, %v2452_v60  ;;  %v2453_v10 = vmax.f32 %v2289_v21, 0.0  ;;  %v2080_v21 = vadd.f32 %v4788_v15, %v4638_v2 }
 0x25d   :  { %v2835_v61 = vadd.f32 %v2834_v31, %v2788_v19  ;;  %v2789_v17 = vmul.f32 %v2588_v45, %v2453_v10 }
 0x25e   :  { %v4844_v28 = vpop.f32.mrb[52].mxu1  ;;  %v2293_v62 = vpop.f32.mrb[84].mxu0 }
 0x25f   :  { %v2836_v27 = vadd.f32 %v2835_v61, %v2789_v17  ;;  %v2294_v16 = vadd.f32 %v2293_v62, %v2069_v52  ;;  %v2134_v39 = vpop.f32.mrb[53].mxu1  ;;  %v2295_v23 = vpop.f32.mrb[85].mxu0 }
 0x260   :  { %v4848_v26 = vpop.f32.mrb[54].mxu1  ;;  %v2296_v54 = vpop.f32.mrb[86].mxu0 }
 0x261   :  { %v2454_v55 = vmax.f32 %v2294_v16, 0.0  ;;  %v2297_v32 = vadd.f32 %v2296_v54, %v2072_v49  ;;  %v2137_v20 = vpop.f32.mrb[55].mxu1  ;;  %v2298_v40 = vpop.f32.mrb[87].mxu0  ;;  %v2085_v16 = vadd.f32 %v4794_v59, %v4656_v5  ;;  %v2088_v54 = vadd.f32 %v4798_v58, %v4654_v46 }
 0x262   :  { %v2613_v5 = vpop.permute.xlu0 %2612 }
 0x263   :  { %v2790_v14 = vmul.f32 %v2593_v0, %v2454_v55  ;;  %v2455_v31 = vmax.f32 %v2297_v32, 0.0 }
 0x265   :  { %v2837_v4 = vadd.f32 %v2836_v27, %v2790_v14  ;;  %v2791_v7 = vmul.f32 %v2598_v51, %v2455_v31  ;;  %v2608_v27 = vpop.permute.xlu1 %2607 }
 0x266   :  { %v4852_v8 = vpop.f32.mrb[56].mxu1  ;;  %v2301_v60 = vpop.f32.mrb[88].mxu0 }
 0x267   :  { %v2838_v48 = vadd.f32 %v2837_v4, %v2791_v7  ;;  %v2302_v24 = vadd.f32 %v2301_v60, %v2077_v53  ;;  %v2142_v56 = vpop.f32.mrb[57].mxu1  ;;  %v2303_v19 = vpop.f32.mrb[89].mxu0 }
 0x268   :  { %v4856_v10 = vpop.f32.mrb[58].mxu1  ;;  %v2304_v45 = vpop.f32.mrb[90].mxu0  ;;  %v2096_v56 = vadd.f32 %v4808_v34, %v4670_v63 }
 0x269   :  { %v2456_v52 = vmax.f32 %v2302_v24, 0.0  ;;  %v2305_v61 = vadd.f32 %v2304_v45, %v2080_v21  ;;  %v2145_v17 = vpop.f32.mrb[59].mxu1  ;;  %v2306_v62 = vpop.f32.mrb[91].mxu0  ;;  %v2093_v21 = vadd.f32 %v4805_v11, %v4672_v22 }
 0x26a   :  { %v2618_v60 = vpop.permute.xlu1 %2617  ;;  %v2623_v22 = vpop.permute.xlu0 %2622 }
 0x26b   :  { %v2792_v3 = vmul.f32 %v2603_v13, %v2456_v52  ;;  %v2457_v49 = vmax.f32 %v2305_v61, 0.0 }
 0x26d   :  { %v2839_v39 = vadd.f32 %v2838_v48, %v2792_v3  ;;  %v2793_v2 = vmul.f32 %v2608_v27, %v2457_v49 }
 0x26e   :  { %v4860_v15 = vpop.f32.mrb[60].mxu1  ;;  %v2309_v23 = vpop.f32.mrb[92].mxu0 }
 0x26f   :  { %v2840_v55 = vadd.f32 %v2839_v39, %v2793_v2  ;;  %v2310_v32 = vadd.f32 %v2309_v23, %v2085_v16  ;;  %v2150_v20 = vpop.f32.mrb[61].mxu1  ;;  %v2311_v40 = vpop.f32.mrb[93].mxu0  ;;  %v2101_v2 = vadd.f32 %v4812_v9, %v4688_v12 }
 0x270   :  { %v4864_v0 = vpop.f32.mrb[62].mxu1  ;;  %v2312_v14 = vpop.f32.mrb[94].mxu0 }
 0x271   :  { %v2458_v31 = vmax.f32 %v2310_v32, 0.0  ;;  %v2313_v51 = vadd.f32 %v2312_v14, %v2088_v54  ;;  %v2153_v53 = vpop.f32.mrb[63].mxu1  ;;  %v2314_v4 = vpop.f32.mrb[95].mxu0 }
 0x272   :  { %v2628_v39 = vpop.permute.xlu1 %2627  ;;  %v2633_v12 = vpop.permute.xlu0 %2632 }
 0x273   :  { %v2794_v59 = vmul.f32 %v2613_v5, %v2458_v31  ;;  %v2459_v7 = vmax.f32 %v2313_v51, 0.0 }
 0x275   :  { %v2841_v48 = vadd.f32 %v2840_v55, %v2794_v59  ;;  %v2795_v46 = vmul.f32 %v2618_v60, %v2459_v7  ;;  %v2104_v55 = vadd.f32 %v4816_v33, %v4680_v29 }
 0x276   :  { %v4868_v58 = vpop.f32.mrb[64].mxu1  ;;  %v2317_v24 = vpop.f32.mrb[96].mxu0 }
 0x277   :  { %v2842_v19 = vadd.f32 %v2841_v48, %v2795_v46  ;;  %v2318_v45 = vadd.f32 %v2317_v24, %v2093_v21  ;;  %v2158_v52 = vpop.f32.mrb[65].mxu1  ;;  %v2319_v61 = vpop.f32.mrb[97].mxu0  ;;  %v2109_v21 = vadd.f32 %v4820_v6, %v4692_v42  ;;  %v2112_v24 = vadd.f32 %v4824_v25, %v4690_v37 }
 0x278   :  { %v4872_v17 = vpop.f32.mrb[66].mxu1  ;;  %v2320_v62 = vpop.f32.mrb[98].mxu0 }
 0x279   :  { %v2460_v13 = vmax.f32 %v2318_v45, 0.0  ;;  %v2321_v3 = vadd.f32 %v2320_v62, %v2096_v56  ;;  %v2161_v49 = vpop.f32.mrb[67].mxu1  ;;  %v2322_v27 = vpop.f32.mrb[99].mxu0 }
 0x27a   :  { %v2638_v60 = vpop.permute.xlu1 %2637  ;;  %v2643_v6 = vpop.permute.xlu0 %2642 }
 0x27b   :  { %v2796_v11 = vmul.f32 %v2623_v22, %v2460_v13  ;;  %v2461_v16 = vmax.f32 %v2321_v3, 0.0 }
 0x27d   :  { %v2843_v23 = vadd.f32 %v2842_v19, %v2796_v11  ;;  %v2797_v63 = vmul.f32 %v2628_v39, %v2461_v16  ;;  %v2117_v16 = vadd.f32 %v4828_v43, %v4708_v36  ;;  %v2125_v36 = vadd.f32 %v4836_v18, %v4721_v38 }
 0x27e   :  { %v4876_v34 = vpop.f32.mrb[68].mxu1  ;;  %v2325_v54 = vpop.f32.mrb[100].mxu0  ;;  %v2133_v38 = vadd.f32 %v4844_v28, %v4731_v57  ;;  %v2141_v57 = vadd.f32 %v4852_v8, %v4737_v47 }
 0x27f   :  { %v2844_v32 = vadd.f32 %v2843_v23, %v2797_v63  ;;  %v2326_v20 = vadd.f32 %v2325_v54, %v2101_v2  ;;  %v2166_v40 = vpop.f32.mrb[69].mxu1  ;;  %v2327_v14 = vpop.f32.mrb[101].mxu0  ;;  %v2120_v2 = vadd.f32 %v4832_v44, %v4706_v30  ;;  %v2128_v30 = vadd.f32 %v4840_v1, %v4719_v50 }
 0x280   :  { %v4880_v31 = vpop.f32.mrb[70].mxu1  ;;  %v2328_v51 = vpop.f32.mrb[102].mxu0  ;;  %v2136_v50 = vadd.f32 %v4848_v26, %v4726_v35  ;;  %v2144_v35 = vadd.f32 %v4856_v10, %v4733_v41  ;;  %v4974_v41 = vld [vmem:[#allocation6_spill] sm:$0xff] }
 0x281   :  { %v2462_v53 = vmax.f32 %v2326_v20, 0.0  ;;  %v2329_v4 = vadd.f32 %v2328_v51, %v2104_v55  ;;  %v2169_v5 = vpop.f32.mrb[71].mxu1  ;;  %v2330_v59 = vpop.f32.mrb[103].mxu0  ;;  %v2152_v10 = vadd.f32 %v4864_v0, %v4974_v41 }
 0x282   :  { %v2648_v42 = vpop.permute.xlu1 %2647  ;;  %v2653_v20 = vpop.permute.xlu0 %2652 }
 0x283   :  { %v2798_v9 = vmul.f32 %v2633_v12, %v2462_v53  ;;  %v2463_v7 = vmax.f32 %v2329_v4, 0.0 }
 0x285   :  { %v2845_v48 = vadd.f32 %v2844_v32, %v2798_v9  ;;  %v2799_v29 = vmul.f32 %v2638_v60, %v2463_v7 }
 0x286   :  { %v4884_v33 = vpop.f32.mrb[72].mxu1  ;;  %v2333_v46 = vpop.f32.mrb[104].mxu0 }
 0x287   :  { %v2846_v56 = vadd.f32 %v2845_v48, %v2799_v29  ;;  %v2334_v19 = vadd.f32 %v2333_v46, %v2109_v21  ;;  %v2174_v45 = vpop.f32.mrb[73].mxu1  ;;  %v2335_v52 = vpop.f32.mrb[105].mxu0 }
 0x288   :  { %v4888_v61 = vpop.f32.mrb[74].mxu1  ;;  %v2336_v62 = vpop.f32.mrb[106].mxu0 }
 0x289   :  { %v2464_v13 = vmax.f32 %v2334_v19, 0.0  ;;  %v2337_v3 = vadd.f32 %v2336_v62, %v2112_v24  ;;  %v2338_v49 = vpop.f32.mrb[107].mxu0  ;;  %v2177_v27 = vpop.f32.mrb[75].mxu1 }
 0x28a   :  { %v2658_v55 = vpop.permute.xlu1 %2657  ;;  %v2663_v9 = vpop.permute.xlu0 %2662 }
 0x28b   :  { %v2800_v22 = vmul.f32 %v2643_v6, %v2464_v13  ;;  %v2465_v11 = vmax.f32 %v2337_v3, 0.0 }
 0x28d   :  { %v2847_v39 = vadd.f32 %v2846_v56, %v2800_v22  ;;  %v2801_v37 = vmul.f32 %v2648_v42, %v2465_v11 }
 0x28e   :  { %v2341_v25 = vpop.f32.mrb[108].mxu0  ;;  %v2668_v59 = vpop.permute.xlu1 %2667 }
 0x28f   :  { %v2848_v23 = vadd.f32 %v2847_v39, %v2801_v37  ;;  %v2342_v63 = vadd.f32 %v2341_v25, %v2117_v16  ;;  %v2343_v54 = vpop.f32.mrb[109].mxu0  ;;  %v2673_v45 = vpop.permute.xlu0 %2672 }
 0x290   :  { %v2344_v32 = vpop.f32.mrb[110].mxu0 }
 0x291   :  { %v2466_v40 = vmax.f32 %v2342_v63, 0.0  ;;  %v2345_v14 = vadd.f32 %v2344_v32, %v2120_v2  ;;  %v2346_v51 = vpop.f32.mrb[111].mxu0 }
 0x292   :  { %v2678_v19 = vpop.permute.xlu1 %2677 }
 0x293   :  { %v2802_v53 = vmul.f32 %v2653_v20, %v2466_v40  ;;  %v2467_v4 = vmax.f32 %v2345_v14, 0.0  ;;  %v2683_v11 = vpop.permute.xlu0 %2682 }
 0x295   :  { %v2849_v43 = vadd.f32 %v2848_v23, %v2802_v53  ;;  %v2803_v5 = vmul.f32 %v2658_v55, %v2467_v4  ;;  %v4973_v53 = vld [vmem:[#allocation7_spill] sm:$0xff] }
 0x296   :  { %v2349_v12 = vpop.f32.mrb[112].mxu0  ;;  %v2688_v22 = vpop.permute.xlu1 %2687  ;;  %v2149_v47 = vadd.f32 %v4860_v15, %v4973_v53  ;;  %v4975_v15 = vld [vmem:[#allocation9_spill] sm:$0xff] }
 0x297   :  { %v2850_v44 = vadd.f32 %v2849_v43, %v2803_v5  ;;  %v2350_v7 = vadd.f32 %v2349_v12, %v2125_v36  ;;  %v2351_v60 = vpop.f32.mrb[113].mxu0  ;;  %v2693_v55 = vpop.permute.xlu0 %2692 }
 0x298   :  { %v2352_v21 = vpop.f32.mrb[114].mxu0 }
 0x299   :  { %v2468_v48 = vmax.f32 %v2350_v7, 0.0  ;;  %v2353_v29 = vadd.f32 %v2352_v21, %v2128_v30  ;;  %v2354_v46 = vpop.f32.mrb[115].mxu0 }
 0x29a   :  { %v2698_v63 = vpop.permute.xlu1 %2697 }
 0x29b   :  { %v2804_v24 = vmul.f32 %v2663_v9, %v2468_v48  ;;  %v2469_v56 = vmax.f32 %v2353_v29, 0.0  ;;  %v2703_v5 = vpop.permute.xlu0 %2702 }
 0x29d   :  { %v2851_v18 = vadd.f32 %v2850_v44, %v2804_v24  ;;  %v2805_v52 = vmul.f32 %v2668_v59, %v2469_v56  ;;  %v2157_v24 = vadd.f32 %v4868_v58, %v4975_v15 }
 0x29e   :  { %v2357_v62 = vpop.f32.mrb[116].mxu0  ;;  %v2708_v36 = vpop.permute.xlu1 %2707 }
 0x29f   :  { %v2852_v1 = vadd.f32 %v2851_v18, %v2805_v52  ;;  %v2358_v13 = vadd.f32 %v2357_v62, %v2133_v38  ;;  %v2359_v3 = vpop.f32.mrb[117].mxu0  ;;  %v2713_v46 = vpop.permute.xlu0 %2712  ;;  %v4976_v18 = vld [vmem:[#allocation8_spill] sm:$0xff] }
 0x2a0   :  { %v2360_v49 = vpop.f32.mrb[118].mxu0  ;;  %v2160_v0 = vadd.f32 %v4872_v17, %v4976_v18 }
 0x2a1   :  { %v2470_v27 = vmax.f32 %v2358_v13, 0.0  ;;  %v2361_v42 = vadd.f32 %v2360_v49, %v2136_v50  ;;  %v2362_v6 = vpop.f32.mrb[119].mxu0 }
 0x2a2   :  { %v2718_v29 = vpop.permute.xlu1 %2717 }
 0x2a3   :  { %v2806_v16 = vmul.f32 %v2673_v45, %v2470_v27  ;;  %v2471_v39 = vmax.f32 %v2361_v42, 0.0 }
 0x2a5   :  { %v2853_v28 = vadd.f32 %v2852_v1, %v2806_v16  ;;  %v2807_v37 = vmul.f32 %v2678_v19, %v2471_v39  ;;  %v2723_v16 = vpop.permute.xlu0 %2722  ;;  %v4977_v39 = vld [vmem:[#allocation11_spill] sm:$0xff] }
 0x2a6   :  { %v2365_v25 = vpop.f32.mrb[120].mxu0  ;;  %v2728_v58 = vpop.permute.xlu1 %2727 }
 0x2a7   :  { %v2854_v26 = vadd.f32 %v2853_v28, %v2807_v37  ;;  %v2366_v2 = vadd.f32 %v2365_v25, %v2141_v57  ;;  %v2367_v23 = vpop.f32.mrb[121].mxu0  ;;  %v2165_v57 = vadd.f32 %v4876_v34, %v4977_v39 }
 0x2a8   :  { %v2368_v54 = vpop.f32.mrb[122].mxu0 }
 0x2a9   :  { %v2472_v32 = vmax.f32 %v2366_v2, 0.0  ;;  %v2369_v20 = vadd.f32 %v2368_v54, %v2144_v35  ;;  %v2370_v40 = vpop.f32.mrb[123].mxu0  ;;  %v4978_v35 = vld [vmem:[#allocation10_spill] sm:$0xff] }
 0x2aa   :  { %v2738_v34 = vpop.permute.xlu1 %2737 }
 0x2ab   :  { %v2808_v14 = vmul.f32 %v2683_v11, %v2472_v32  ;;  %v2473_v51 = vmax.f32 %v2369_v20, 0.0 }
 0x2ad   :  { %v2855_v8 = vadd.f32 %v2854_v26, %v2808_v14  ;;  %v2809_v4 = vmul.f32 %v2688_v22, %v2473_v51  ;;  %v2168_v26 = vadd.f32 %v4880_v31, %v4978_v35 }
 0x2ae   :  { %v2373_v43 = vpop.f32.mrb[124].mxu0 }
 0x2af   :  { %v2856_v59 = vadd.f32 %v2855_v8, %v2809_v4  ;;  %v2374_v12 = vadd.f32 %v2373_v43, %v2149_v47  ;;  %v2375_v9 = vpop.f32.mrb[125].mxu0  ;;  %v2733_v8 = vpop.permute.xlu0 %2732  ;;  %v4979_v4 = vld [vmem:[#allocation13_spill] sm:$0xff] }
 0x2b0   :  { %v2376_v30 = vpop.f32.mrb[126].mxu0 }
 0x2b1   :  { %v2474_v44 = vmax.f32 %v2374_v12, 0.0  ;;  %v2377_v7 = vadd.f32 %v2376_v30, %v2152_v10  ;;  %v2378_v60 = vpop.f32.mrb[127].mxu0  ;;  %v4980_v10 = vld [vmem:[#allocation12_spill] sm:$0xff]  ;;  %v4981_v12 = vld [vmem:[#allocation15_spill] sm:$0xff] }
 0x2b3   :  { %v2810_v21 = vmul.f32 %v2693_v55, %v2474_v44  ;;  %v2475_v48 = vmax.f32 %v2377_v7, 0.0 }
 0x2b5   :  { %v2857_v56 = vadd.f32 %v2856_v59, %v2810_v21  ;;  %v2811_v19 = vmul.f32 %v2698_v63, %v2475_v48  ;;  %v2176_v59 = vadd.f32 %v4888_v61, %v4980_v10  ;;  %v2743_v61 = vpop.permute.xlu0 %2742 }
 0x2b6   :  { %v2381_v45 = vpop.f32.mrb[128].mxu0  ;;  %v2405_v38 = vpop.f32.mrb[76].mxu1 }
 0x2b7   :  { %v2858_v52 = vadd.f32 %v2857_v56, %v2811_v19  ;;  %v2382_v62 = vadd.f32 %v2381_v45, %v2157_v24  ;;  %v2383_v50 = vpop.f32.mrb[129].mxu0  ;;  %v2407_v1 = vpop.f32.mrb[77].mxu1  ;;  %v3267_v9 = vadd.f32 %v2405_v38, %v4981_v12  ;;  %v4983_v45 = vld [vmem:[#allocation17_spill] sm:$0xff]  ;;  %v4984_v38 = vld [vmem:[#allocation16_spill] sm:$0xff]  ;;  %v4990_v12 = vld [vmem:[#allocation22_spill] sm:$0xff] }
 0x2b8   :  { %v2384_v13 = vpop.f32.mrb[130].mxu0  ;;  %v2408_v3 = vpop.f32.mrb[78].mxu1 }
 0x2b9   :  { %v2476_v49 = vmax.f32 %v2382_v62, 0.0  ;;  %v2385_v27 = vadd.f32 %v2384_v13, %v2160_v0  ;;  %v2386_v42 = vpop.f32.mrb[131].mxu0  ;;  %v2410_v6 = vpop.f32.mrb[79].mxu1 }
 0x2bb   :  { %v2812_v22 = vmul.f32 %v2703_v5, %v2476_v49  ;;  %v2477_v11 = vmax.f32 %v2385_v27, 0.0  ;;  %v2748_v49 = vpop.permute.xlu1 %2747 }
 0x2bd   :  { %v2859_v28 = vadd.f32 %v2858_v52, %v2812_v22  ;;  %v2813_v37 = vmul.f32 %v2708_v36, %v2477_v11  ;;  %v2173_v36 = vadd.f32 %v4884_v33, %v4979_v4  ;;  %v4989_v4 = vld [vmem:[#allocation23_spill] sm:$0xff] }
 0x2be   :  { %v2389_v17 = vpop.f32.mrb[132].mxu0  ;;  %v2413_v25 = vpop.f32.mrb[80].mxu1 }
 0x2bf   :  { %v2860_v2 = vadd.f32 %v2859_v28, %v2813_v37  ;;  %v2390_v23 = vadd.f32 %v2389_v17, %v2165_v57  ;;  %v2391_v63 = vpop.f32.mrb[133].mxu0  ;;  %v2415_v54 = vpop.f32.mrb[81].mxu1  ;;  %v3269_v18 = vadd.f32 %v2413_v25, %v4983_v45 }
 0x2c0   :  { %v2392_v55 = vpop.f32.mrb[134].mxu0  ;;  %v2416_v32 = vpop.f32.mrb[82].mxu1 }
 0x2c1   :  { %v2478_v20 = vmax.f32 %v2390_v23, 0.0  ;;  %v2393_v40 = vadd.f32 %v2392_v55, %v2168_v26  ;;  %v2394_v14 = vpop.f32.mrb[135].mxu0  ;;  %v2418_v51 = vpop.f32.mrb[83].mxu1  ;;  %v3270_v50 = vadd.f32 %v2416_v32, %v4984_v38  ;;  %v2484_v6 = vmax.f32 %v3269_v18, 0.0 }
 0x2c2   :  { %v2753_v26 = vpop.permute.xlu0 %2752  ;;  %v2758_v55 = vpop.permute.xlu1 %2757  ;;  %v4988_v14 = vld [vmem:[#allocation20_spill] sm:$0xff] }
 0x2c3   :  { %v2814_v53 = vmul.f32 %v2713_v46, %v2478_v20  ;;  %v2479_v47 = vmax.f32 %v2393_v40, 0.0  ;;  %v4982_v46 = vld [vmem:[#allocation14_spill] sm:$0xff]  ;;  %v2485_v37 = vmax.f32 %v3270_v50, 0.0  ;;  %v2882_v50 = vstv %s4953_s6 }
 0x2c4   :  { %v3268_v15 = vadd.f32 %v2408_v3, %v4982_v46  ;;  %v4985_v3 = vld [vmem:[#allocation19_spill] sm:$0xff] }
 0x2c5   :  { %v2861_v43 = vadd.f32 %v2860_v2, %v2814_v53  ;;  %v2815_v5 = vmul.f32 %v2718_v29, %v2479_v47  ;;  %v2482_v29 = vmax.f32 %v3267_v9, 0.0  ;;  %v2820_v2 = vmul.f32 %v2743_v61, %v2484_v6 }
 0x2c6   :  { %v2397_v31 = vpop.f32.mrb[136].mxu0  ;;  %v2421_v41 = vpop.f32.mrb[84].mxu1  ;;  %v2483_v62 = vmax.f32 %v3268_v15, 0.0  ;;  %v2821_v32 = vmul.f32 %v2748_v49, %v2485_v37 }
 0x2c7   :  { %v2862_v30 = vadd.f32 %v2861_v43, %v2815_v5  ;;  %v2398_v44 = vadd.f32 %v2397_v31, %v2173_v36  ;;  %v2399_v7 = vpop.f32.mrb[137].mxu0  ;;  %v2423_v60 = vpop.f32.mrb[85].mxu1  ;;  %v2818_v42 = vmul.f32 %v2733_v8, %v2482_v29  ;;  %v3271_v22 = vadd.f32 %v2421_v41, %v4985_v3 }
 0x2c8   :  { %v2400_v21 = vpop.f32.mrb[138].mxu0  ;;  %v2424_v48 = vpop.f32.mrb[86].mxu1  ;;  %v2819_v28 = vmul.f32 %v2738_v34, %v2483_v62 }
 0x2c9   :  { %v2480_v24 = vmax.f32 %v2398_v44, 0.0  ;;  %v2401_v56 = vadd.f32 %v2400_v21, %v2176_v59  ;;  %v2426_v33 = vpop.f32.mrb[87].mxu1  ;;  %v2402_v19 = vpop.f32.mrb[139].mxu0  ;;  %v2486_v23 = vmax.f32 %v3271_v22, 0.0 }
 0x2ca   :  { %v2763_v5 = vpop.permute.xlu0 %2762  ;;  %v2768_v44 = vpop.permute.xlu1 %2767 }
 0x2cb   :  { %v2816_v0 = vmul.f32 %v2723_v16, %v2480_v24  ;;  %v2481_v52 = vmax.f32 %v2401_v56, 0.0  ;;  %v4986_v16 = vld [vmem:[#allocation18_spill] sm:$0xff]  ;;  %v2822_v47 = vmul.f32 %v2753_v26, %v2486_v23 }
 0x2cc   :  { %v3272_v25 = vadd.f32 %v2424_v48, %v4986_v16 }
 0x2cd   :  { %v2863_v1 = vadd.f32 %v2862_v30, %v2816_v0  ;;  %v2817_v13 = vmul.f32 %v2728_v58, %v2481_v52  ;;  %v4987_v58 = vld [vmem:[#allocation21_spill] sm:$0xff] }
 0x2ce   :  { %v2429_v27 = vpop.f32.mrb[88].mxu1  ;;  %v2487_v20 = vmax.f32 %v3272_v25, 0.0  ;;  %v2773_v24 = vpop.permute.xlu0 %2772 }
 0x2cf   :  { %v2864_v11 = vadd.f32 %v2863_v1, %v2817_v13  ;;  %v2431_v39 = vpop.f32.mrb[89].mxu1  ;;  %v3273_v54 = vadd.f32 %v2429_v27, %v4987_v58  ;;  %v2778_v19 = vpop.permute.xlu1 %2777 }
 0x2d0   :  { %v2432_v57 = vpop.f32.mrb[90].mxu1  ;;  %v2823_v41 = vmul.f32 %v2758_v55, %v2487_v20 }
 0x2d1   :  { %v2865_v17 = vadd.f32 %v2864_v11, %v2818_v42  ;;  %v2434_v35 = vpop.f32.mrb[91].mxu1  ;;  %v3274_v51 = vadd.f32 %v2432_v57, %v4988_v14  ;;  %v2488_v8 = vmax.f32 %v3273_v54, 0.0 }
 0x2d3   :  { %v2866_v63 = vadd.f32 %v2865_v17, %v2819_v28  ;;  %v2489_v59 = vmax.f32 %v3274_v51, 0.0  ;;  %v2824_v60 = vmul.f32 %v2763_v5, %v2488_v8 }
 0x2d5   :  { %v2867_v40 = vadd.f32 %v2866_v63, %v2820_v2  ;;  %v2825_v46 = vmul.f32 %v2768_v44, %v2489_v59 }
 0x2d6   :  { %v2437_v53 = vpop.f32.mrb[92].mxu1 }
 0x2d7   :  { %v2868_v34 = vadd.f32 %v2867_v40, %v2821_v32  ;;  %v3275_v36 = vadd.f32 %v2437_v53, %v4989_v4  ;;  %v2439_v43 = vpop.f32.mrb[93].mxu1 }
 0x2d8   :  { %v2440_v31 = vpop.f32.mrb[94].mxu1 }
 0x2d9   :  { %v2869_v10 = vadd.f32 %v2868_v34, %v2822_v47  ;;  %v3276_v9 = vadd.f32 %v2440_v31, %v4990_v12  ;;  %v2442_v30 = vpop.f32.mrb[95].mxu1  ;;  %v2490_v21 = vmax.f32 %v3275_v36, 0.0 }
 0x2db   :  { %v2870_v7 = vadd.f32 %v2869_v10, %v2823_v41  ;;  %v2491_v15 = vmax.f32 %v3276_v9, 0.0  ;;  %v2826_v33 = vmul.f32 %v2773_v24, %v2490_v21 }
 0x2dd   :  { %v2871_v48 = vadd.f32 %v2870_v7, %v2824_v60  ;;  %v2827_v45 = vmul.f32 %v2778_v19, %v2491_v15 }
 0x2df   :  { %v2872_v56 = vadd.f32 %v2871_v48, %v2825_v46 }
 0x2e1   :  { %v2873_v29 = vadd.f32 %v2872_v56, %v2826_v33 }
 0x2e3   :  { %v2874_v18 = vadd.f32 %v2873_v29, %v2827_v45 }
 0x2e5   :  { %v2875_v0 = vrot.slane %v2874_v18, 4 }
 0x2e7   :  { %v2876_v52 = vadd.f32 %v2875_v0, %v2874_v18 }
 0x2e9   :  { %v2877_v61 = vrot.slane %v2876_v52, 2 }
 0x2eb   :  { %v2878_v62 = vadd.f32 %v2877_v61, %v2876_v52 }
 0x2ed   :  { %v2879_v38 = vrot.slane %v2878_v62, 1 }
 0x2ef   :  { %v2880_v1 = vadd.f32 %v2879_v38, %v2878_v62 }
 0x2f1   :  { %v2883_v13 = vadd.f32 %v2882_v50, %v2880_v1 }
 0x2f3   :  { %2884 = vst [vmem:[#allocation3] sm:$0x1] %v2883_v13 }
 0x2f4   :  { %3490 = shalt.err (!%p3487_p4)
}
 0x2f5   :  { %s3491_s10 = scalar_lea.hbm %s4954_s7, 16 }
 0x2f6   :  { %p3492_p5 = scmp.ne.s32.totalorder %s4954_s7, %s3491_s10  ;;  %p3495_p6 = scmp.lt.u32.totalorder %s3491_s10, %s4954_s7 }
 0x2f8   :  { %p3497_p7 = pnand %p3495_p6, %p3492_p5 }
 0x2fa   :  { %3500 = shalt.err (!%p3497_p7)
}
 0x2fb   :  { %2894 = dma.vmem_to_hbm [thread:$0]  %s2892_s30, 16, %s4954_s7, [#allocation4]  }
 0x2fc   :  { %3501 = dma.done.wait [#allocation4], 16  }
 0x2fd   :  { %3502 = vsyncadd [#allocation4], 4294967280 }
 0x2fe   :  { %2898 = vsyncpa [#allocation4], 1 }

</bundles_post_ra>
